<compile_context>
chip_gen: v7x
topology: tpu7x:2x2x1
jax: 0.10.0
libtpu: 0.0.40
codegen_flags: <defaults>
</compile_context>

<pallas_src>
import jax
import jax.numpy as jnp
from jax import lax
from jax.experimental import pallas as pl
from jax.experimental.pallas import tpu as pltpu

KS = 3          # kernel size
BN_EPS = 1e-5


# ----------------------------------------------------------------------------
# Fused Pallas kernel: downsample (stride 2) -> conv1+BN1+ReLU -> conv2+BN2+ReLU
# ----------------------------------------------------------------------------
def _down_lwgated_kernel(xph_ref, w0_ref, b0_ref, w1_ref, b1_ref, sh1_ref,
                         w2_ref, b2_ref, sh2_ref, o_ref, pad1_ref, pad2_ref):
    _, ho, wo, cout = o_ref.shape
    cin = pad1_ref.shape[-1]
    m = ho * wo

    def gated_conv(read_tap, w_ref, b_ref, c_in, c_out, shift_ref=None):
        """One LWGatedConv2D as 9 shift-and-accumulate matmuls.

        w_ref: (9*c_in, c_out+1) -- mask conv fused as the last column,
        b_ref: (1, c_out+1).  Optional folded-BN shift + ReLU at the end.
        """
        wv = w_ref[...]                                        # (9*c_in, c_out+1)
        acc = jnp.zeros((m, c_out + 1), jnp.float32)
        for t in range(9):                                     # static unroll
            ky, kx = t // 3, t % 3
            slab = read_tap(ky, kx)                            # (ho, wo, c_in)
            acc = acc + jnp.dot(slab.reshape(m, c_in),
                                wv[t * c_in:(t + 1) * c_in, :],
                                preferred_element_type=jnp.float32)
        acc = acc + b_ref[...]                                 # fused bias row
        feat = acc[:, :c_out]                                  # feature columns
        mlog = acc[:, c_out:c_out + 1]                         # fused mask column
        gate = pl.reciprocal(1.0 + jnp.exp(-mlog), approx=True)   # sigmoid (EUP)
        out = feat * gate
        if shift_ref is not None:                              # folded BN shift + ReLU
            out = jnp.maximum(out + shift_ref[...], 0.0)
        return out                                             # (m, c_out)

    # ---- layer 1: stride-2 downsample (cin -> cin), no BN/ReLU --------------
    # Taps come from the 4 phase-decimated planes of the padded input, so every
    # in-kernel slice is contiguous (no strided loads).
    def tap_down(ky, kx):
        p = (ky % 2) * 2 + (kx % 2)
        return xph_ref[p, ky // 2:ky // 2 + ho, kx // 2:kx // 2 + wo, :]

    a1 = gated_conv(tap_down, w0_ref, b0_ref, cin, cin)
    pad1_ref[...] = jnp.zeros_like(pad1_ref)                   # zero halo border
    pad1_ref[1:ho + 1, 1:wo + 1, :] = a1.reshape(ho, wo, cin)

    # ---- layer 2: stride-1 conv (cin -> cout) + BN1 (scale folded) + ReLU ---
    a2 = gated_conv(lambda ky, kx: pad1_ref[ky:ky + ho, kx:kx + wo, :],
                    w1_ref, b1_ref, cin, cout, sh1_ref)
    pad2_ref[...] = jnp.zeros_like(pad2_ref)
    pad2_ref[1:ho + 1, 1:wo + 1, :] = a2.reshape(ho, wo, cout)

    # ---- layer 3: stride-1 conv (cout -> cout) + BN2 (scale folded) + ReLU --
    a3 = gated_conv(lambda ky, kx: pad2_ref[ky:ky + ho, kx:kx + wo, :],
                    w2_ref, b2_ref, cout, cout, sh2_ref)
    o_ref[...] = a3.reshape(1, ho, wo, cout).astype(o_ref.dtype)


# ----------------------------------------------------------------------------
# Parameter construction / prep
# ----------------------------------------------------------------------------
def make_lwgated_params(key, cin, cout):
    k1, k2, k3, k4 = jax.random.split(key, 4)
    return dict(
        wf_oihw=jax.random.normal(k1, (cout, cin, KS, KS), jnp.float32) * 0.2,
        bf=jax.random.normal(k2, (cout,), jnp.float32) * 0.1,
        wm_oihw=jax.random.normal(k3, (1, cin, KS, KS), jnp.float32) * 0.2,
        bm=jax.random.normal(k4, (1,), jnp.float32) * 0.1,
    )


def make_bn_params(key, c):
    k1, k2, k3, k4 = jax.random.split(key, 4)
    return dict(
        gamma=1.0 + 0.1 * jax.random.normal(k1, (c,), jnp.float32),
        beta=0.1 * jax.random.normal(k2, (c,), jnp.float32),
        mean=0.1 * jax.random.normal(k3, (c,), jnp.float32),
        var=1.0 + 0.1 * jnp.abs(jax.random.normal(k4, (c,), jnp.float32)),
    )


def make_down_lwgated_params(key, cin, cout):
    k1, k2, k3, k4, k5 = jax.random.split(key, 5)
    return dict(
        down=make_lwgated_params(k1, cin, cin),
        c1=make_lwgated_params(k2, cin, cout),
        bn1=make_bn_params(k3, cout),
        c2=make_lwgated_params(k4, cout, cout),
        bn2=make_bn_params(k5, cout),
    )


def fold_bn(bn):
    scale = bn["gamma"] / jnp.sqrt(bn["var"] + BN_EPS)
    shift = bn["beta"] - bn["mean"] * scale
    return scale.reshape(1, -1), shift.reshape(1, -1)


def _prep_gated_weights(p, bn_scale=None):
    """Fuse mask conv as an extra weight column; optionally fold BN scale."""
    cout, cin = p["wf_oihw"].shape[:2]
    # (O,I,KH,KW) -> (KH,KW,I,O) -> (9*Cin, O): row index = (ky*3+kx)*Cin + cin
    wf = jnp.transpose(p["wf_oihw"], (2, 3, 1, 0)).reshape(KS * KS * cin, cout)
    wm = jnp.transpose(p["wm_oihw"], (2, 3, 1, 0)).reshape(KS * KS * cin, 1)
    bf = p["bf"].reshape(1, cout)
    bm = p["bm"].reshape(1, 1)
    if bn_scale is not None:            # BN scale folded into feature weights/bias
        wf = wf * bn_scale
        bf = bf * bn_scale
    w = jnp.concatenate([wf, wm], axis=1)    # (9*Cin, Cout+1)
    b = jnp.concatenate([bf, bm], axis=1)    # (1, Cout+1)
    return w, b


# ----------------------------------------------------------------------------
# Module forward (Pallas) and pure-JAX reference
# ----------------------------------------------------------------------------
@jax.jit
def down_lwgated_pallas(x_nchw, params):
    x = jnp.transpose(x_nchw, (0, 2, 3, 1)).astype(jnp.float32)   # NCHW -> NHWC
    n, h, w, cin = x.shape
    assert h % 2 == 0 and w % 2 == 0, "stride-2 downsample expects even H, W"
    ho, wo = h // 2, w // 2
    cout = params["c1"]["wf_oihw"].shape[0]
    hh, wh = ho + 1, wo + 1

    # Pad once, then split into the 4 stride-2 phases so every downsample tap is
    # a contiguous VMEM slice inside the kernel (replaces the 9x im2col matrix).
    xp = jnp.pad(x, ((0, 0), (1, 1), (1, 1), (0, 0)))
    phases = [xp[:, py::2, px::2, :] for py in (0, 1) for px in (0, 1)]
    xph = jnp.stack(phases, axis=1).reshape(n * 4, hh, wh, cin)   # (n*4, hh, wh, cin)

    w0, b0 = _prep_gated_weights(params["down"])
    s1, sh1 = fold_bn(params["bn1"])
    w1, b1 = _prep_gated_weights(params["c1"], s1)
    s2, sh2 = fold_bn(params["bn2"])
    w2, b2 = _prep_gated_weights(params["c2"], s2)

    rep = lambda i: (0, 0)   # replicated weight/bias blocks
    out = pl.pallas_call(
        _down_lwgated_kernel,
        out_shape=jax.ShapeDtypeStruct((n, ho, wo, cout), jnp.float32),
        grid=(n,),
        in_specs=[
            pl.BlockSpec((4, hh, wh, cin), lambda i: (i, 0, 0, 0)),   # 4 phase planes
            pl.BlockSpec((KS * KS * cin, cin + 1), rep),              # w0 (mask fused)
            pl.BlockSpec((1, cin + 1), rep),                          # b0
            pl.BlockSpec((KS * KS * cin, cout + 1), rep),             # w1 (BN1 scale folded)
            pl.BlockSpec((1, cout + 1), rep),                         # b1
            pl.BlockSpec((1, cout), rep),                             # BN1 shift
            pl.BlockSpec((KS * KS * cout, cout + 1), rep),            # w2 (BN2 scale folded)
            pl.BlockSpec((1, cout + 1), rep),                         # b2
            pl.BlockSpec((1, cout), rep),                             # BN2 shift
        ],
        out_specs=pl.BlockSpec((1, ho, wo, cout), lambda i: (i, 0, 0, 0)),
        scratch_shapes=[
            pltpu.VMEM((ho + 2, wo + 2, cin), jnp.float32),   # padded act after downsample
            pltpu.VMEM((ho + 2, wo + 2, cout), jnp.float32),  # padded act after conv1
        ],
        compiler_params=pltpu.CompilerParams(
            dimension_semantics=("parallel",),       # shard batch across TCs (v7x)
            vmem_limit_bytes=32 * 1024 * 1024,
        ),
    )(xph, w0, b0, w1, b1, sh1, w2, b2, sh2)

    return jnp.transpose(out, (0, 3, 1, 2))          # NHWC -> NCHW


def _conv_ref(x_nhwc, w_oihw, b, stride):
    w_hwio = jnp.transpose(w_oihw, (2, 3, 1, 0))
    y = lax.conv_general_dilated(
        x_nhwc, w_hwio, (stride, stride), ((1, 1), (1, 1)),
        dimension_numbers=("NHWC", "HWIO", "NHWC"))
    return y + b


def _lwgated_ref(x_nhwc, p, stride):
    feat = _conv_ref(x_nhwc, p["wf_oihw"], p["bf"], stride)
    mask = jax.nn.sigmoid(_conv_ref(x_nhwc, p["wm_oihw"], p["bm"], stride))
    return feat * mask


def down_lwgated_ref(x_nchw, params):
    x = jnp.transpose(x_nchw, (0, 2, 3, 1))
    x = _lwgated_ref(x, params["down"], 2)
    x = _lwgated_ref(x, params["c1"], 1)
    s1, h1 = fold_bn(params["bn1"])
    x = jnp.maximum(x * s1 + h1, 0.0)
    x = _lwgated_ref(x, params["c2"], 1)
    s2, h2 = fold_bn(params["bn2"])
    x = jnp.maximum(x * s2 + h2, 0.0)
    return jnp.transpose(x, (0, 3, 1, 2))


if __name__ == "__main__":
    key = jax.random.PRNGKey(0)
    kx, kp = jax.random.split(key)

    N, C_IN, C_OUT, H, W = 2, 4, 8, 16, 16
    x = jax.random.normal(kx, (N, C_IN, H, W), jnp.float32)   # NCHW like PyTorch
    params = make_down_lwgated_params(kp, C_IN, C_OUT)

    out = jax.block_until_ready(down_lwgated_pallas(x, params))
    ref = jax.block_until_ready(down_lwgated_ref(x, params))

    assert out.shape == (N, C_OUT, H // 2, W // 2), out.shape
    err = float(jnp.max(jnp.abs(out - ref)))
    # tolerance accounts for the EUP approximate reciprocal in the sigmoid gate
    assert err < 5e-2, err
    print("KERNEL_OK")
</pallas_src>

<mosaic_0001>
module attributes {stable_mosaic.version = 11 : i64} {
  func.func @_down_lwgated_kernel(%arg0: i32, %arg1: memref<4x9x9x4xf32, #tpu.memory_space<vmem>>, %arg2: memref<36x5xf32, #tpu.memory_space<vmem>>, %arg3: memref<1x5xf32, #tpu.memory_space<vmem>>, %arg4: memref<36x9xf32, #tpu.memory_space<vmem>>, %arg5: memref<1x9xf32, #tpu.memory_space<vmem>>, %arg6: memref<1x8xf32, #tpu.memory_space<vmem>>, %arg7: memref<72x9xf32, #tpu.memory_space<vmem>>, %arg8: memref<1x9xf32, #tpu.memory_space<vmem>>, %arg9: memref<1x8xf32, #tpu.memory_space<vmem>>, %arg10: memref<1x8x8x8xf32, #tpu.memory_space<vmem>>, %arg11: memref<10x10x4xf32, #tpu.memory_space<vmem>>, %arg12: memref<10x10x8xf32, #tpu.memory_space<vmem>>) attributes {dimension_semantics = [#tpu.dimension_semantics<parallel>], iteration_bounds = array<i64: 2>, scalar_prefetch = 0 : i64, scratch_operands = 2 : i64, tpu.core_type = #tpu.core_type<tc>, window_params = [{transform_indices = @transform_0, window_bounds = array<i64: 4, 9, 9, 4>}, {pipeline_mode = #tpu.pipeline_mode<synchronous>, transform_indices = @transform_1, window_bounds = array<i64: 36, 5>}, {pipeline_mode = #tpu.pipeline_mode<synchronous>, transform_indices = @transform_2, window_bounds = array<i64: 1, 5>}, {pipeline_mode = #tpu.pipeline_mode<synchronous>, transform_indices = @transform_3, window_bounds = array<i64: 36, 9>}, {pipeline_mode = #tpu.pipeline_mode<synchronous>, transform_indices = @transform_4, window_bounds = array<i64: 1, 9>}, {pipeline_mode = #tpu.pipeline_mode<synchronous>, transform_indices = @transform_5, window_bounds = array<i64: 1, 8>}, {pipeline_mode = #tpu.pipeline_mode<synchronous>, transform_indices = @transform_6, window_bounds = array<i64: 72, 9>}, {pipeline_mode = #tpu.pipeline_mode<synchronous>, transform_indices = @transform_7, window_bounds = array<i64: 1, 9>}, {pipeline_mode = #tpu.pipeline_mode<synchronous>, transform_indices = @transform_8, window_bounds = array<i64: 1, 8>}, {transform_indices = @transform_9, window_bounds = array<i64: 1, 8, 8, 8>}]} {
    %c0 = arith.constant 0 : index
    %c0_0 = arith.constant 0 : index
    %0 = vector.load %arg2[%c0, %c0_0] : memref<36x5xf32, #tpu.memory_space<vmem>>, vector<36x5xf32>
    %cst = arith.constant 0.000000e+00 : f32
    %1 = vector.broadcast %cst : f32 to vector<64x5xf32>
    %c0_1 = arith.constant 0 : index
    %c0_2 = arith.constant 0 : index
    %c0_3 = arith.constant 0 : index
    %c0_4 = arith.constant 0 : index
    %2 = vector.load %arg1[%c0_1, %c0_2, %c0_3, %c0_4] : memref<4x9x9x4xf32, #tpu.memory_space<vmem>>, vector<1x8x8x4xf32>
    %3 = vector.shape_cast %2 : vector<1x8x8x4xf32> to vector<8x8x4xf32>
    %4 = vector.shape_cast %3 : vector<8x8x4xf32> to vector<64x4xf32>
    %5 = vector.extract_strided_slice %0 {offsets = [0, 0], sizes = [4, 5], strides = [1, 1]} : vector<36x5xf32> to vector<4x5xf32>
    %cst_5 = arith.constant dense<0.000000e+00> : vector<64x5xf32>
    %6 = tpu.matmul %4, %5, %cst_5 {dimension_numbers = #tpu.dot_dimension_numbers<[1], [0], [0], [1], [0, 0, 1, 1], [], []>} : vector<64x4xf32>, vector<4x5xf32>, vector<64x5xf32> -> vector<64x5xf32>
    %7 = arith.addf %1, %6 : vector<64x5xf32>
    %c1 = arith.constant 1 : index
    %c0_6 = arith.constant 0 : index
    %c0_7 = arith.constant 0 : index
    %c0_8 = arith.constant 0 : index
    %8 = vector.load %arg1[%c1, %c0_6, %c0_7, %c0_8] : memref<4x9x9x4xf32, #tpu.memory_space<vmem>>, vector<1x8x8x4xf32>
    %9 = vector.shape_cast %8 : vector<1x8x8x4xf32> to vector<8x8x4xf32>
    %10 = vector.shape_cast %9 : vector<8x8x4xf32> to vector<64x4xf32>
    %11 = vector.extract_strided_slice %0 {offsets = [4, 0], sizes = [4, 5], strides = [1, 1]} : vector<36x5xf32> to vector<4x5xf32>
    %cst_9 = arith.constant dense<0.000000e+00> : vector<64x5xf32>
    %12 = tpu.matmul %10, %11, %cst_9 {dimension_numbers = #tpu.dot_dimension_numbers<[1], [0], [0], [1], [0, 0, 1, 1], [], []>} : vector<64x4xf32>, vector<4x5xf32>, vector<64x5xf32> -> vector<64x5xf32>
    %13 = arith.addf %7, %12 : vector<64x5xf32>
    %c0_10 = arith.constant 0 : index
    %c0_11 = arith.constant 0 : index
    %c1_12 = arith.constant 1 : index
    %c0_13 = arith.constant 0 : index
    %14 = vector.load %arg1[%c0_10, %c0_11, %c1_12, %c0_13] : memref<4x9x9x4xf32, #tpu.memory_space<vmem>>, vector<1x8x8x4xf32>
    %15 = vector.shape_cast %14 : vector<1x8x8x4xf32> to vector<8x8x4xf32>
    %16 = vector.shape_cast %15 : vector<8x8x4xf32> to vector<64x4xf32>
    %17 = vector.extract_strided_slice %0 {offsets = [8, 0], sizes = [4, 5], strides = [1, 1]} : vector<36x5xf32> to vector<4x5xf32>
    %cst_14 = arith.constant dense<0.000000e+00> : vector<64x5xf32>
    %18 = tpu.matmul %16, %17, %cst_14 {dimension_numbers = #tpu.dot_dimension_numbers<[1], [0], [0], [1], [0, 0, 1, 1], [], []>} : vector<64x4xf32>, vector<4x5xf32>, vector<64x5xf32> -> vector<64x5xf32>
    %19 = arith.addf %13, %18 : vector<64x5xf32>
    %c2 = arith.constant 2 : index
    %c0_15 = arith.constant 0 : index
    %c0_16 = arith.constant 0 : index
    %c0_17 = arith.constant 0 : index
    %20 = vector.load %arg1[%c2, %c0_15, %c0_16, %c0_17] : memref<4x9x9x4xf32, #tpu.memory_space<vmem>>, vector<1x8x8x4xf32>
    %21 = vector.shape_cast %20 : vector<1x8x8x4xf32> to vector<8x8x4xf32>
    %22 = vector.shape_cast %21 : vector<8x8x4xf32> to vector<64x4xf32>
    %23 = vector.extract_strided_slice %0 {offsets = [12, 0], sizes = [4, 5], strides = [1, 1]} : vector<36x5xf32> to vector<4x5xf32>
    %cst_18 = arith.constant dense<0.000000e+00> : vector<64x5xf32>
    %24 = tpu.matmul %22, %23, %cst_18 {dimension_numbers = #tpu.dot_dimension_numbers<[1], [0], [0], [1], [0, 0, 1, 1], [], []>} : vector<64x4xf32>, vector<4x5xf32>, vector<64x5xf32> -> vector<64x5xf32>
    %25 = arith.addf %19, %24 : vector<64x5xf32>
    %c3 = arith.constant 3 : index
    %c0_19 = arith.constant 0 : index
    %c0_20 = arith.constant 0 : index
    %c0_21 = arith.constant 0 : index
    %26 = vector.load %arg1[%c3, %c0_19, %c0_20, %c0_21] : memref<4x9x9x4xf32, #tpu.memory_space<vmem>>, vector<1x8x8x4xf32>
    %27 = vector.shape_cast %26 : vector<1x8x8x4xf32> to vector<8x8x4xf32>
    %28 = vector.shape_cast %27 : vector<8x8x4xf32> to vector<64x4xf32>
    %29 = vector.extract_strided_slice %0 {offsets = [16, 0], sizes = [4, 5], strides = [1, 1]} : vector<36x5xf32> to vector<4x5xf32>
    %cst_22 = arith.constant dense<0.000000e+00> : vector<64x5xf32>
    %30 = tpu.matmul %28, %29, %cst_22 {dimension_numbers = #tpu.dot_dimension_numbers<[1], [0], [0], [1], [0, 0, 1, 1], [], []>} : vector<64x4xf32>, vector<4x5xf32>, vector<64x5xf32> -> vector<64x5xf32>
    %31 = arith.addf %25, %30 : vector<64x5xf32>
    %c2_23 = arith.constant 2 : index
    %c0_24 = arith.constant 0 : index
    %c1_25 = arith.constant 1 : index
    %c0_26 = arith.constant 0 : index
    %32 = vector.load %arg1[%c2_23, %c0_24, %c1_25, %c0_26] : memref<4x9x9x4xf32, #tpu.memory_space<vmem>>, vector<1x8x8x4xf32>
    %33 = vector.shape_cast %32 : vector<1x8x8x4xf32> to vector<8x8x4xf32>
    %34 = vector.shape_cast %33 : vector<8x8x4xf32> to vector<64x4xf32>
    %35 = vector.extract_strided_slice %0 {offsets = [20, 0], sizes = [4, 5], strides = [1, 1]} : vector<36x5xf32> to vector<4x5xf32>
    %cst_27 = arith.constant dense<0.000000e+00> : vector<64x5xf32>
    %36 = tpu.matmul %34, %35, %cst_27 {dimension_numbers = #tpu.dot_dimension_numbers<[1], [0], [0], [1], [0, 0, 1, 1], [], []>} : vector<64x4xf32>, vector<4x5xf32>, vector<64x5xf32> -> vector<64x5xf32>
    %37 = arith.addf %31, %36 : vector<64x5xf32>
    %c0_28 = arith.constant 0 : index
    %c1_29 = arith.constant 1 : index
    %c0_30 = arith.constant 0 : index
    %c0_31 = arith.constant 0 : index
    %38 = vector.load %arg1[%c0_28, %c1_29, %c0_30, %c0_31] : memref<4x9x9x4xf32, #tpu.memory_space<vmem>>, vector<1x8x8x4xf32>
    %39 = vector.shape_cast %38 : vector<1x8x8x4xf32> to vector<8x8x4xf32>
    %40 = vector.shape_cast %39 : vector<8x8x4xf32> to vector<64x4xf32>
    %41 = vector.extract_strided_slice %0 {offsets = [24, 0], sizes = [4, 5], strides = [1, 1]} : vector<36x5xf32> to vector<4x5xf32>
    %cst_32 = arith.constant dense<0.000000e+00> : vector<64x5xf32>
    %42 = tpu.matmul %40, %41, %cst_32 {dimension_numbers = #tpu.dot_dimension_numbers<[1], [0], [0], [1], [0, 0, 1, 1], [], []>} : vector<64x4xf32>, vector<4x5xf32>, vector<64x5xf32> -> vector<64x5xf32>
    %43 = arith.addf %37, %42 : vector<64x5xf32>
    %c1_33 = arith.constant 1 : index
    %c1_34 = arith.constant 1 : index
    %c0_35 = arith.constant 0 : index
    %c0_36 = arith.constant 0 : index
    %44 = vector.load %arg1[%c1_33, %c1_34, %c0_35, %c0_36] : memref<4x9x9x4xf32, #tpu.memory_space<vmem>>, vector<1x8x8x4xf32>
    %45 = vector.shape_cast %44 : vector<1x8x8x4xf32> to vector<8x8x4xf32>
    %46 = vector.shape_cast %45 : vector<8x8x4xf32> to vector<64x4xf32>
    %47 = vector.extract_strided_slice %0 {offsets = [28, 0], sizes = [4, 5], strides = [1, 1]} : vector<36x5xf32> to vector<4x5xf32>
    %cst_37 = arith.constant dense<0.000000e+00> : vector<64x5xf32>
    %48 = tpu.matmul %46, %47, %cst_37 {dimension_numbers = #tpu.dot_dimension_numbers<[1], [0], [0], [1], [0, 0, 1, 1], [], []>} : vector<64x4xf32>, vector<4x5xf32>, vector<64x5xf32> -> vector<64x5xf32>
    %49 = arith.addf %43, %48 : vector<64x5xf32>
    %c0_38 = arith.constant 0 : index
    %c1_39 = arith.constant 1 : index
    %c1_40 = arith.constant 1 : index
    %c0_41 = arith.constant 0 : index
    %50 = vector.load %arg1[%c0_38, %c1_39, %c1_40, %c0_41] : memref<4x9x9x4xf32, #tpu.memory_space<vmem>>, vector<1x8x8x4xf32>
    %51 = vector.shape_cast %50 : vector<1x8x8x4xf32> to vector<8x8x4xf32>
    %52 = vector.shape_cast %51 : vector<8x8x4xf32> to vector<64x4xf32>
    %53 = vector.extract_strided_slice %0 {offsets = [32, 0], sizes = [4, 5], strides = [1, 1]} : vector<36x5xf32> to vector<4x5xf32>
    %cst_42 = arith.constant dense<0.000000e+00> : vector<64x5xf32>
    %54 = tpu.matmul %52, %53, %cst_42 {dimension_numbers = #tpu.dot_dimension_numbers<[1], [0], [0], [1], [0, 0, 1, 1], [], []>} : vector<64x4xf32>, vector<4x5xf32>, vector<64x5xf32> -> vector<64x5xf32>
    %55 = arith.addf %49, %54 : vector<64x5xf32>
    %c0_43 = arith.constant 0 : index
    %c0_44 = arith.constant 0 : index
    %56 = vector.load %arg3[%c0_43, %c0_44] : memref<1x5xf32, #tpu.memory_space<vmem>>, vector<1x5xf32>
    %57 = vector.broadcast %56 : vector<1x5xf32> to vector<64x5xf32>
    %58 = arith.addf %55, %57 : vector<64x5xf32>
    %59 = vector.extract_strided_slice %58 {offsets = [0, 0], sizes = [64, 4], strides = [1, 1]} : vector<64x5xf32> to vector<64x4xf32>
    %60 = vector.extract_strided_slice %58 {offsets = [0, 4], sizes = [64, 1], strides = [1, 1]} : vector<64x5xf32> to vector<64x1xf32>
    %cst_45 = arith.constant 0.000000e+00 : f32
    %61 = vector.broadcast %cst_45 : f32 to vector<64x1xf32>
    %62 = arith.subf %61, %60 : vector<64x1xf32>
    %63 = math.exp %62 : vector<64x1xf32>
    %cst_46 = arith.constant 1.000000e+00 : f32
    %64 = vector.broadcast %cst_46 : f32 to vector<64x1xf32>
    %65 = arith.addf %64, %63 : vector<64x1xf32>
    %66 = tpu.reciprocal %65 {approx = true} : vector<64x1xf32> -> vector<64x1xf32>
    %67 = vector.broadcast %66 : vector<64x1xf32> to vector<64x4xf32>
    %68 = arith.mulf %59, %67 : vector<64x4xf32>
    %cst_47 = arith.constant 0.000000e+00 : f32
    %69 = vector.broadcast %cst_47 : f32 to vector<10x10x4xf32>
    %c0_48 = arith.constant 0 : index
    %c0_49 = arith.constant 0 : index
    %c0_50 = arith.constant 0 : index
    %70 = vector.load %arg11[%c0_48, %c0_49, %c0_50] : memref<10x10x4xf32, #tpu.memory_space<vmem>>, vector<10x10x4xf32>
    tpu.vector_store %arg11[%c0_48, %c0_49, %c0_50], %69 {strides = array<i32>} : memref<10x10x4xf32, #tpu.memory_space<vmem>>, vector<10x10x4xf32>,
    %71 = vector.shape_cast %68 : vector<64x4xf32> to vector<8x8x4xf32>
    %c1_51 = arith.constant 1 : index
    %c1_52 = arith.constant 1 : index
    %c0_53 = arith.constant 0 : index
    %72 = vector.load %arg11[%c1_51, %c1_52, %c0_53] : memref<10x10x4xf32, #tpu.memory_space<vmem>>, vector<8x8x4xf32>
    tpu.vector_store %arg11[%c1_51, %c1_52, %c0_53], %71 {strides = array<i32>} : memref<10x10x4xf32, #tpu.memory_space<vmem>>, vector<8x8x4xf32>,
    %c0_54 = arith.constant 0 : index
    %c0_55 = arith.constant 0 : index
    %73 = vector.load %arg4[%c0_54, %c0_55] : memref<36x9xf32, #tpu.memory_space<vmem>>, vector<36x9xf32>
    %cst_56 = arith.constant 0.000000e+00 : f32
    %74 = vector.broadcast %cst_56 : f32 to vector<64x9xf32>
    %c0_57 = arith.constant 0 : index
    %c0_58 = arith.constant 0 : index
    %c0_59 = arith.constant 0 : index
    %75 = vector.load %arg11[%c0_57, %c0_58, %c0_59] : memref<10x10x4xf32, #tpu.memory_space<vmem>>, vector<8x8x4xf32>
    %76 = vector.shape_cast %75 : vector<8x8x4xf32> to vector<64x4xf32>
    %77 = vector.extract_strided_slice %73 {offsets = [0, 0], sizes = [4, 9], strides = [1, 1]} : vector<36x9xf32> to vector<4x9xf32>
    %cst_60 = arith.constant dense<0.000000e+00> : vector<64x9xf32>
    %78 = tpu.matmul %76, %77, %cst_60 {dimension_numbers = #tpu.dot_dimension_numbers<[1], [0], [0], [1], [0, 0, 1, 1], [], []>} : vector<64x4xf32>, vector<4x9xf32>, vector<64x9xf32> -> vector<64x9xf32>
    %79 = arith.addf %74, %78 : vector<64x9xf32>
    %c0_61 = arith.constant 0 : index
    %c1_62 = arith.constant 1 : index
    %c0_63 = arith.constant 0 : index
    %80 = vector.load %arg11[%c0_61, %c1_62, %c0_63] : memref<10x10x4xf32, #tpu.memory_space<vmem>>, vector<8x8x4xf32>
    %81 = vector.shape_cast %80 : vector<8x8x4xf32> to vector<64x4xf32>
    %82 = vector.extract_strided_slice %73 {offsets = [4, 0], sizes = [4, 9], strides = [1, 1]} : vector<36x9xf32> to vector<4x9xf32>
    %cst_64 = arith.constant dense<0.000000e+00> : vector<64x9xf32>
    %83 = tpu.matmul %81, %82, %cst_64 {dimension_numbers = #tpu.dot_dimension_numbers<[1], [0], [0], [1], [0, 0, 1, 1], [], []>} : vector<64x4xf32>, vector<4x9xf32>, vector<64x9xf32> -> vector<64x9xf32>
    %84 = arith.addf %79, %83 : vector<64x9xf32>
    %c0_65 = arith.constant 0 : index
    %c2_66 = arith.constant 2 : index
    %c0_67 = arith.constant 0 : index
    %85 = vector.load %arg11[%c0_65, %c2_66, %c0_67] : memref<10x10x4xf32, #tpu.memory_space<vmem>>, vector<8x8x4xf32>
    %86 = vector.shape_cast %85 : vector<8x8x4xf32> to vector<64x4xf32>
    %87 = vector.extract_strided_slice %73 {offsets = [8, 0], sizes = [4, 9], strides = [1, 1]} : vector<36x9xf32> to vector<4x9xf32>
    %cst_68 = arith.constant dense<0.000000e+00> : vector<64x9xf32>
    %88 = tpu.matmul %86, %87, %cst_68 {dimension_numbers = #tpu.dot_dimension_numbers<[1], [0], [0], [1], [0, 0, 1, 1], [], []>} : vector<64x4xf32>, vector<4x9xf32>, vector<64x9xf32> -> vector<64x9xf32>
    %89 = arith.addf %84, %88 : vector<64x9xf32>
    %c1_69 = arith.constant 1 : index
    %c0_70 = arith.constant 0 : index
    %c0_71 = arith.constant 0 : index
    %90 = vector.load %arg11[%c1_69, %c0_70, %c0_71] : memref<10x10x4xf32, #tpu.memory_space<vmem>>, vector<8x8x4xf32>
    %91 = vector.shape_cast %90 : vector<8x8x4xf32> to vector<64x4xf32>
    %92 = vector.extract_strided_slice %73 {offsets = [12, 0], sizes = [4, 9], strides = [1, 1]} : vector<36x9xf32> to vector<4x9xf32>
    %cst_72 = arith.constant dense<0.000000e+00> : vector<64x9xf32>
    %93 = tpu.matmul %91, %92, %cst_72 {dimension_numbers = #tpu.dot_dimension_numbers<[1], [0], [0], [1], [0, 0, 1, 1], [], []>} : vector<64x4xf32>, vector<4x9xf32>, vector<64x9xf32> -> vector<64x9xf32>
    %94 = arith.addf %89, %93 : vector<64x9xf32>
    %c1_73 = arith.constant 1 : index
    %c1_74 = arith.constant 1 : index
    %c0_75 = arith.constant 0 : index
    %95 = vector.load %arg11[%c1_73, %c1_74, %c0_75] : memref<10x10x4xf32, #tpu.memory_space<vmem>>, vector<8x8x4xf32>
    %96 = vector.shape_cast %95 : vector<8x8x4xf32> to vector<64x4xf32>
    %97 = vector.extract_strided_slice %73 {offsets = [16, 0], sizes = [4, 9], strides = [1, 1]} : vector<36x9xf32> to vector<4x9xf32>
    %cst_76 = arith.constant dense<0.000000e+00> : vector<64x9xf32>
    %98 = tpu.matmul %96, %97, %cst_76 {dimension_numbers = #tpu.dot_dimension_numbers<[1], [0], [0], [1], [0, 0, 1, 1], [], []>} : vector<64x4xf32>, vector<4x9xf32>, vector<64x9xf32> -> vector<64x9xf32>
    %99 = arith.addf %94, %98 : vector<64x9xf32>
    %c1_77 = arith.constant 1 : index
    %c2_78 = arith.constant 2 : index
    %c0_79 = arith.constant 0 : index
    %100 = vector.load %arg11[%c1_77, %c2_78, %c0_79] : memref<10x10x4xf32, #tpu.memory_space<vmem>>, vector<8x8x4xf32>
    %101 = vector.shape_cast %100 : vector<8x8x4xf32> to vector<64x4xf32>
    %102 = vector.extract_strided_slice %73 {offsets = [20, 0], sizes = [4, 9], strides = [1, 1]} : vector<36x9xf32> to vector<4x9xf32>
    %cst_80 = arith.constant dense<0.000000e+00> : vector<64x9xf32>
    %103 = tpu.matmul %101, %102, %cst_80 {dimension_numbers = #tpu.dot_dimension_numbers<[1], [0], [0], [1], [0, 0, 1, 1], [], []>} : vector<64x4xf32>, vector<4x9xf32>, vector<64x9xf32> -> vector<64x9xf32>
    %104 = arith.addf %99, %103 : vector<64x9xf32>
    %c2_81 = arith.constant 2 : index
    %c0_82 = arith.constant 0 : index
    %c0_83 = arith.constant 0 : index
    %105 = vector.load %arg11[%c2_81, %c0_82, %c0_83] : memref<10x10x4xf32, #tpu.memory_space<vmem>>, vector<8x8x4xf32>
    %106 = vector.shape_cast %105 : vector<8x8x4xf32> to vector<64x4xf32>
    %107 = vector.extract_strided_slice %73 {offsets = [24, 0], sizes = [4, 9], strides = [1, 1]} : vector<36x9xf32> to vector<4x9xf32>
    %cst_84 = arith.constant dense<0.000000e+00> : vector<64x9xf32>
    %108 = tpu.matmul %106, %107, %cst_84 {dimension_numbers = #tpu.dot_dimension_numbers<[1], [0], [0], [1], [0, 0, 1, 1], [], []>} : vector<64x4xf32>, vector<4x9xf32>, vector<64x9xf32> -> vector<64x9xf32>
    %109 = arith.addf %104, %108 : vector<64x9xf32>
    %c2_85 = arith.constant 2 : index
    %c1_86 = arith.constant 1 : index
    %c0_87 = arith.constant 0 : index
    %110 = vector.load %arg11[%c2_85, %c1_86, %c0_87] : memref<10x10x4xf32, #tpu.memory_space<vmem>>, vector<8x8x4xf32>
    %111 = vector.shape_cast %110 : vector<8x8x4xf32> to vector<64x4xf32>
    %112 = vector.extract_strided_slice %73 {offsets = [28, 0], sizes = [4, 9], strides = [1, 1]} : vector<36x9xf32> to vector<4x9xf32>
    %cst_88 = arith.constant dense<0.000000e+00> : vector<64x9xf32>
    %113 = tpu.matmul %111, %112, %cst_88 {dimension_numbers = #tpu.dot_dimension_numbers<[1], [0], [0], [1], [0, 0, 1, 1], [], []>} : vector<64x4xf32>, vector<4x9xf32>, vector<64x9xf32> -> vector<64x9xf32>
    %114 = arith.addf %109, %113 : vector<64x9xf32>
    %c2_89 = arith.constant 2 : index
    %c2_90 = arith.constant 2 : index
    %c0_91 = arith.constant 0 : index
    %115 = vector.load %arg11[%c2_89, %c2_90, %c0_91] : memref<10x10x4xf32, #tpu.memory_space<vmem>>, vector<8x8x4xf32>
    %116 = vector.shape_cast %115 : vector<8x8x4xf32> to vector<64x4xf32>
    %117 = vector.extract_strided_slice %73 {offsets = [32, 0], sizes = [4, 9], strides = [1, 1]} : vector<36x9xf32> to vector<4x9xf32>
    %cst_92 = arith.constant dense<0.000000e+00> : vector<64x9xf32>
    %118 = tpu.matmul %116, %117, %cst_92 {dimension_numbers = #tpu.dot_dimension_numbers<[1], [0], [0], [1], [0, 0, 1, 1], [], []>} : vector<64x4xf32>, vector<4x9xf32>, vector<64x9xf32> -> vector<64x9xf32>
    %119 = arith.addf %114, %118 : vector<64x9xf32>
    %c0_93 = arith.constant 0 : index
    %c0_94 = arith.constant 0 : index
    %120 = vector.load %arg5[%c0_93, %c0_94] : memref<1x9xf32, #tpu.memory_space<vmem>>, vector<1x9xf32>
    %121 = vector.broadcast %120 : vector<1x9xf32> to vector<64x9xf32>
    %122 = arith.addf %119, %121 : vector<64x9xf32>
    %123 = vector.extract_strided_slice %122 {offsets = [0, 0], sizes = [64, 8], strides = [1, 1]} : vector<64x9xf32> to vector<64x8xf32>
    %124 = vector.extract_strided_slice %122 {offsets = [0, 8], sizes = [64, 1], strides = [1, 1]} : vector<64x9xf32> to vector<64x1xf32>
    %cst_95 = arith.constant 0.000000e+00 : f32
    %125 = vector.broadcast %cst_95 : f32 to vector<64x1xf32>
    %126 = arith.subf %125, %124 : vector<64x1xf32>
    %127 = math.exp %126 : vector<64x1xf32>
    %cst_96 = arith.constant 1.000000e+00 : f32
    %128 = vector.broadcast %cst_96 : f32 to vector<64x1xf32>
    %129 = arith.addf %128, %127 : vector<64x1xf32>
    %130 = tpu.reciprocal %129 {approx = true} : vector<64x1xf32> -> vector<64x1xf32>
    %131 = vector.broadcast %130 : vector<64x1xf32> to vector<64x8xf32>
    %132 = arith.mulf %123, %131 : vector<64x8xf32>
    %c0_97 = arith.constant 0 : index
    %c0_98 = arith.constant 0 : index
    %133 = vector.load %arg6[%c0_97, %c0_98] : memref<1x8xf32, #tpu.memory_space<vmem>>, vector<1x8xf32>
    %134 = vector.broadcast %133 : vector<1x8xf32> to vector<64x8xf32>
    %135 = arith.addf %132, %134 : vector<64x8xf32>
    %cst_99 = arith.constant 0.000000e+00 : f32
    %136 = vector.broadcast %cst_99 : f32 to vector<64x8xf32>
    %137 = arith.maximumf %135, %136 : vector<64x8xf32>
    %cst_100 = arith.constant 0.000000e+00 : f32
    %138 = vector.broadcast %cst_100 : f32 to vector<10x10x8xf32>
    %c0_101 = arith.constant 0 : index
    %c0_102 = arith.constant 0 : index
    %c0_103 = arith.constant 0 : index
    %139 = vector.load %arg12[%c0_101, %c0_102, %c0_103] : memref<10x10x8xf32, #tpu.memory_space<vmem>>, vector<10x10x8xf32>
    tpu.vector_store %arg12[%c0_101, %c0_102, %c0_103], %138 {strides = array<i32>} : memref<10x10x8xf32, #tpu.memory_space<vmem>>, vector<10x10x8xf32>,
    %140 = vector.shape_cast %137 : vector<64x8xf32> to vector<8x8x8xf32>
    %c1_104 = arith.constant 1 : index
    %c1_105 = arith.constant 1 : index
    %c0_106 = arith.constant 0 : index
    %141 = vector.load %arg12[%c1_104, %c1_105, %c0_106] : memref<10x10x8xf32, #tpu.memory_space<vmem>>, vector<8x8x8xf32>
    tpu.vector_store %arg12[%c1_104, %c1_105, %c0_106], %140 {strides = array<i32>} : memref<10x10x8xf32, #tpu.memory_space<vmem>>, vector<8x8x8xf32>,
    %c0_107 = arith.constant 0 : index
    %c0_108 = arith.constant 0 : index
    %142 = vector.load %arg7[%c0_107, %c0_108] : memref<72x9xf32, #tpu.memory_space<vmem>>, vector<72x9xf32>
    %cst_109 = arith.constant 0.000000e+00 : f32
    %143 = vector.broadcast %cst_109 : f32 to vector<64x9xf32>
    %c0_110 = arith.constant 0 : index
    %c0_111 = arith.constant 0 : index
    %c0_112 = arith.constant 0 : index
    %144 = vector.load %arg12[%c0_110, %c0_111, %c0_112] : memref<10x10x8xf32, #tpu.memory_space<vmem>>, vector<8x8x8xf32>
    %145 = vector.shape_cast %144 : vector<8x8x8xf32> to vector<64x8xf32>
    %146 = vector.extract_strided_slice %142 {offsets = [0, 0], sizes = [8, 9], strides = [1, 1]} : vector<72x9xf32> to vector<8x9xf32>
    %cst_113 = arith.constant dense<0.000000e+00> : vector<64x9xf32>
    %147 = tpu.matmul %145, %146, %cst_113 {dimension_numbers = #tpu.dot_dimension_numbers<[1], [0], [0], [1], [0, 0, 1, 1], [], []>} : vector<64x8xf32>, vector<8x9xf32>, vector<64x9xf32> -> vector<64x9xf32>
    %148 = arith.addf %143, %147 : vector<64x9xf32>
    %c0_114 = arith.constant 0 : index
    %c1_115 = arith.constant 1 : index
    %c0_116 = arith.constant 0 : index
    %149 = vector.load %arg12[%c0_114, %c1_115, %c0_116] : memref<10x10x8xf32, #tpu.memory_space<vmem>>, vector<8x8x8xf32>
    %150 = vector.shape_cast %149 : vector<8x8x8xf32> to vector<64x8xf32>
    %151 = vector.extract_strided_slice %142 {offsets = [8, 0], sizes = [8, 9], strides = [1, 1]} : vector<72x9xf32> to vector<8x9xf32>
    %cst_117 = arith.constant dense<0.000000e+00> : vector<64x9xf32>
    %152 = tpu.matmul %150, %151, %cst_117 {dimension_numbers = #tpu.dot_dimension_numbers<[1], [0], [0], [1], [0, 0, 1, 1], [], []>} : vector<64x8xf32>, vector<8x9xf32>, vector<64x9xf32> -> vector<64x9xf32>
    %153 = arith.addf %148, %152 : vector<64x9xf32>
    %c0_118 = arith.constant 0 : index
    %c2_119 = arith.constant 2 : index
    %c0_120 = arith.constant 0 : index
    %154 = vector.load %arg12[%c0_118, %c2_119, %c0_120] : memref<10x10x8xf32, #tpu.memory_space<vmem>>, vector<8x8x8xf32>
    %155 = vector.shape_cast %154 : vector<8x8x8xf32> to vector<64x8xf32>
    %156 = vector.extract_strided_slice %142 {offsets = [16, 0], sizes = [8, 9], strides = [1, 1]} : vector<72x9xf32> to vector<8x9xf32>
    %cst_121 = arith.constant dense<0.000000e+00> : vector<64x9xf32>
    %157 = tpu.matmul %155, %156, %cst_121 {dimension_numbers = #tpu.dot_dimension_numbers<[1], [0], [0], [1], [0, 0, 1, 1], [], []>} : vector<64x8xf32>, vector<8x9xf32>, vector<64x9xf32> -> vector<64x9xf32>
    %158 = arith.addf %153, %157 : vector<64x9xf32>
    %c1_122 = arith.constant 1 : index
    %c0_123 = arith.constant 0 : index
    %c0_124 = arith.constant 0 : index
    %159 = vector.load %arg12[%c1_122, %c0_123, %c0_124] : memref<10x10x8xf32, #tpu.memory_space<vmem>>, vector<8x8x8xf32>
    %160 = vector.shape_cast %159 : vector<8x8x8xf32> to vector<64x8xf32>
    %161 = vector.extract_strided_slice %142 {offsets = [24, 0], sizes = [8, 9], strides = [1, 1]} : vector<72x9xf32> to vector<8x9xf32>
    %cst_125 = arith.constant dense<0.000000e+00> : vector<64x9xf32>
    %162 = tpu.matmul %160, %161, %cst_125 {dimension_numbers = #tpu.dot_dimension_numbers<[1], [0], [0], [1], [0, 0, 1, 1], [], []>} : vector<64x8xf32>, vector<8x9xf32>, vector<64x9xf32> -> vector<64x9xf32>
    %163 = arith.addf %158, %162 : vector<64x9xf32>
    %c1_126 = arith.constant 1 : index
    %c1_127 = arith.constant 1 : index
    %c0_128 = arith.constant 0 : index
    %164 = vector.load %arg12[%c1_126, %c1_127, %c0_128] : memref<10x10x8xf32, #tpu.memory_space<vmem>>, vector<8x8x8xf32>
    %165 = vector.shape_cast %164 : vector<8x8x8xf32> to vector<64x8xf32>
    %166 = vector.extract_strided_slice %142 {offsets = [32, 0], sizes = [8, 9], strides = [1, 1]} : vector<72x9xf32> to vector<8x9xf32>
    %cst_129 = arith.constant dense<0.000000e+00> : vector<64x9xf32>
    %167 = tpu.matmul %165, %166, %cst_129 {dimension_numbers = #tpu.dot_dimension_numbers<[1], [0], [0], [1], [0, 0, 1, 1], [], []>} : vector<64x8xf32>, vector<8x9xf32>, vector<64x9xf32> -> vector<64x9xf32>
    %168 = arith.addf %163, %167 : vector<64x9xf32>
    %c1_130 = arith.constant 1 : index
    %c2_131 = arith.constant 2 : index
    %c0_132 = arith.constant 0 : index
    %169 = vector.load %arg12[%c1_130, %c2_131, %c0_132] : memref<10x10x8xf32, #tpu.memory_space<vmem>>, vector<8x8x8xf32>
    %170 = vector.shape_cast %169 : vector<8x8x8xf32> to vector<64x8xf32>
    %171 = vector.extract_strided_slice %142 {offsets = [40, 0], sizes = [8, 9], strides = [1, 1]} : vector<72x9xf32> to vector<8x9xf32>
    %cst_133 = arith.constant dense<0.000000e+00> : vector<64x9xf32>
    %172 = tpu.matmul %170, %171, %cst_133 {dimension_numbers = #tpu.dot_dimension_numbers<[1], [0], [0], [1], [0, 0, 1, 1], [], []>} : vector<64x8xf32>, vector<8x9xf32>, vector<64x9xf32> -> vector<64x9xf32>
    %173 = arith.addf %168, %172 : vector<64x9xf32>
    %c2_134 = arith.constant 2 : index
    %c0_135 = arith.constant 0 : index
    %c0_136 = arith.constant 0 : index
    %174 = vector.load %arg12[%c2_134, %c0_135, %c0_136] : memref<10x10x8xf32, #tpu.memory_space<vmem>>, vector<8x8x8xf32>
    %175 = vector.shape_cast %174 : vector<8x8x8xf32> to vector<64x8xf32>
    %176 = vector.extract_strided_slice %142 {offsets = [48, 0], sizes = [8, 9], strides = [1, 1]} : vector<72x9xf32> to vector<8x9xf32>
    %cst_137 = arith.constant dense<0.000000e+00> : vector<64x9xf32>
    %177 = tpu.matmul %175, %176, %cst_137 {dimension_numbers = #tpu.dot_dimension_numbers<[1], [0], [0], [1], [0, 0, 1, 1], [], []>} : vector<64x8xf32>, vector<8x9xf32>, vector<64x9xf32> -> vector<64x9xf32>
    %178 = arith.addf %173, %177 : vector<64x9xf32>
    %c2_138 = arith.constant 2 : index
    %c1_139 = arith.constant 1 : index
    %c0_140 = arith.constant 0 : index
    %179 = vector.load %arg12[%c2_138, %c1_139, %c0_140] : memref<10x10x8xf32, #tpu.memory_space<vmem>>, vector<8x8x8xf32>
    %180 = vector.shape_cast %179 : vector<8x8x8xf32> to vector<64x8xf32>
    %181 = vector.extract_strided_slice %142 {offsets = [56, 0], sizes = [8, 9], strides = [1, 1]} : vector<72x9xf32> to vector<8x9xf32>
    %cst_141 = arith.constant dense<0.000000e+00> : vector<64x9xf32>
    %182 = tpu.matmul %180, %181, %cst_141 {dimension_numbers = #tpu.dot_dimension_numbers<[1], [0], [0], [1], [0, 0, 1, 1], [], []>} : vector<64x8xf32>, vector<8x9xf32>, vector<64x9xf32> -> vector<64x9xf32>
    %183 = arith.addf %178, %182 : vector<64x9xf32>
    %c2_142 = arith.constant 2 : index
    %c2_143 = arith.constant 2 : index
    %c0_144 = arith.constant 0 : index
    %184 = vector.load %arg12[%c2_142, %c2_143, %c0_144] : memref<10x10x8xf32, #tpu.memory_space<vmem>>, vector<8x8x8xf32>
    %185 = vector.shape_cast %184 : vector<8x8x8xf32> to vector<64x8xf32>
    %186 = vector.extract_strided_slice %142 {offsets = [64, 0], sizes = [8, 9], strides = [1, 1]} : vector<72x9xf32> to vector<8x9xf32>
    %cst_145 = arith.constant dense<0.000000e+00> : vector<64x9xf32>
    %187 = tpu.matmul %185, %186, %cst_145 {dimension_numbers = #tpu.dot_dimension_numbers<[1], [0], [0], [1], [0, 0, 1, 1], [], []>} : vector<64x8xf32>, vector<8x9xf32>, vector<64x9xf32> -> vector<64x9xf32>
    %188 = arith.addf %183, %187 : vector<64x9xf32>
    %c0_146 = arith.constant 0 : index
    %c0_147 = arith.constant 0 : index
    %189 = vector.load %arg8[%c0_146, %c0_147] : memref<1x9xf32, #tpu.memory_space<vmem>>, vector<1x9xf32>
    %190 = vector.broadcast %189 : vector<1x9xf32> to vector<64x9xf32>
    %191 = arith.addf %188, %190 : vector<64x9xf32>
    %192 = vector.extract_strided_slice %191 {offsets = [0, 0], sizes = [64, 8], strides = [1, 1]} : vector<64x9xf32> to vector<64x8xf32>
    %193 = vector.extract_strided_slice %191 {offsets = [0, 8], sizes = [64, 1], strides = [1, 1]} : vector<64x9xf32> to vector<64x1xf32>
    %cst_148 = arith.constant 0.000000e+00 : f32
    %194 = vector.broadcast %cst_148 : f32 to vector<64x1xf32>
    %195 = arith.subf %194, %193 : vector<64x1xf32>
    %196 = math.exp %195 : vector<64x1xf32>
    %cst_149 = arith.constant 1.000000e+00 : f32
    %197 = vector.broadcast %cst_149 : f32 to vector<64x1xf32>
    %198 = arith.addf %197, %196 : vector<64x1xf32>
    %199 = tpu.reciprocal %198 {approx = true} : vector<64x1xf32> -> vector<64x1xf32>
    %200 = vector.broadcast %199 : vector<64x1xf32> to vector<64x8xf32>
    %201 = arith.mulf %192, %200 : vector<64x8xf32>
    %c0_150 = arith.constant 0 : index
    %c0_151 = arith.constant 0 : index
    %202 = vector.load %arg9[%c0_150, %c0_151] : memref<1x8xf32, #tpu.memory_space<vmem>>, vector<1x8xf32>
    %203 = vector.broadcast %202 : vector<1x8xf32> to vector<64x8xf32>
    %204 = arith.addf %201, %203 : vector<64x8xf32>
    %cst_152 = arith.constant 0.000000e+00 : f32
    %205 = vector.broadcast %cst_152 : f32 to vector<64x8xf32>
    %206 = arith.maximumf %204, %205 : vector<64x8xf32>
    %207 = vector.shape_cast %206 : vector<64x8xf32> to vector<1x8x8x8xf32>
    %c0_153 = arith.constant 0 : index
    %c0_154 = arith.constant 0 : index
    %c0_155 = arith.constant 0 : index
    %c0_156 = arith.constant 0 : index
    %208 = vector.load %arg10[%c0_153, %c0_154, %c0_155, %c0_156] : memref<1x8x8x8xf32, #tpu.memory_space<vmem>>, vector<1x8x8x8xf32>
    tpu.vector_store %arg10[%c0_153, %c0_154, %c0_155, %c0_156], %207 {strides = array<i32>} : memref<1x8x8x8xf32, #tpu.memory_space<vmem>>, vector<1x8x8x8xf32>,
    return
  }
  func.func @transform_0(%arg0: i32) -> (i32, i32, i32, i32) {
    %c0_i32 = arith.constant 0 : i32
    %c0_i32_0 = arith.constant 0 : i32
    %c0_i32_1 = arith.constant 0 : i32
    %c0_i32_2 = arith.constant 0 : i32
    return %arg0, %c0_i32, %c0_i32_0, %c0_i32_1 : i32, i32, i32, i32
  }
  func.func @transform_1(%arg0: i32) -> (i32, i32) {
    %c0_i32 = arith.constant 0 : i32
    %c0_i32_0 = arith.constant 0 : i32
    %c0_i32_1 = arith.constant 0 : i32
    return %c0_i32, %c0_i32_0 : i32, i32
  }
  func.func @transform_2(%arg0: i32) -> (i32, i32) {
    %c0_i32 = arith.constant 0 : i32
    %c0_i32_0 = arith.constant 0 : i32
    %c0_i32_1 = arith.constant 0 : i32
    return %c0_i32, %c0_i32_0 : i32, i32
  }
  func.func @transform_3(%arg0: i32) -> (i32, i32) {
    %c0_i32 = arith.constant 0 : i32
    %c0_i32_0 = arith.constant 0 : i32
    %c0_i32_1 = arith.constant 0 : i32
    return %c0_i32, %c0_i32_0 : i32, i32
  }
  func.func @transform_4(%arg0: i32) -> (i32, i32) {
    %c0_i32 = arith.constant 0 : i32
    %c0_i32_0 = arith.constant 0 : i32
    %c0_i32_1 = arith.constant 0 : i32
    return %c0_i32, %c0_i32_0 : i32, i32
  }
  func.func @transform_5(%arg0: i32) -> (i32, i32) {
    %c0_i32 = arith.constant 0 : i32
    %c0_i32_0 = arith.constant 0 : i32
    %c0_i32_1 = arith.constant 0 : i32
    return %c0_i32, %c0_i32_0 : i32, i32
  }
  func.func @transform_6(%arg0: i32) -> (i32, i32) {
    %c0_i32 = arith.constant 0 : i32
    %c0_i32_0 = arith.constant 0 : i32
    %c0_i32_1 = arith.constant 0 : i32
    return %c0_i32, %c0_i32_0 : i32, i32
  }
  func.func @transform_7(%arg0: i32) -> (i32, i32) {
    %c0_i32 = arith.constant 0 : i32
    %c0_i32_0 = arith.constant 0 : i32
    %c0_i32_1 = arith.constant 0 : i32
    return %c0_i32, %c0_i32_0 : i32, i32
  }
  func.func @transform_8(%arg0: i32) -> (i32, i32) {
    %c0_i32 = arith.constant 0 : i32
    %c0_i32_0 = arith.constant 0 : i32
    %c0_i32_1 = arith.constant 0 : i32
    return %c0_i32, %c0_i32_0 : i32, i32
  }
  func.func @transform_9(%arg0: i32) -> (i32, i32, i32, i32) {
    %c0_i32 = arith.constant 0 : i32
    %c0_i32_0 = arith.constant 0 : i32
    %c0_i32_1 = arith.constant 0 : i32
    %c0_i32_2 = arith.constant 0 : i32
    return %arg0, %c0_i32, %c0_i32_0, %c0_i32_1 : i32, i32, i32, i32
  }
}

</mosaic_0001>

<bundles_post_ra>
// kernel: down_lwgated_pallas.1
= control target key start
LH: loop header
LB: loop body
LE: loop exit
PB: predicated region body
PF: predicated region fallthrough
CT: control target
= control target key end

     0   :  { %s6061_s30 = smov 0   ;;  %s6900_s0 = inlined_call_operand.vmem [shape: f32[8,9,9,4], index: 0, kind: input, shape index: {}]   ;;  %s6901_s1 = inlined_call_operand.vmem [shape: f32[36,5], index: 1, kind: input, shape index: {}]   ;;  %s6902_s2 = inlined_call_operand.vmem [shape: f32[1,5], index: 2, kind: input, shape index: {}]   ;;  %s6903_s3 = inlined_call_operand.vmem [shape: f32[36,9], index: 3, kind: input, shape index: {}]   ;;  %s6904_s4 = inlined_call_operand.vmem [shape: f32[1,9], index: 4, kind: input, shape index: {}]   ;;  %s6905_s5 = inlined_call_operand.vmem [shape: f32[1,8], index: 5, kind: input, shape index: {}]   ;;  %s6906_s6 = inlined_call_operand.vmem [shape: f32[72,9], index: 6, kind: input, shape index: {}]   ;;  %s6907_s7 = inlined_call_operand.vmem [shape: f32[1,9], index: 7, kind: input, shape index: {}]   ;;  %s6908_s8 = inlined_call_operand.vmem [shape: f32[1,8], index: 8, kind: input, shape index: {}]   ;;  %s6909_s9 = inlined_call_operand.vmem [shape: f32[2,8,8,8], index: 9, kind: output, shape index: {}]  }
   0x1 LB: > { %s6067_s10 = sadd.s32 4294967295, %s6006_s30   ;;  %p4770_p0 = scmp.ge.s32.totalorder %s6006_s30, 1  ;;  %s6006_s30 = sphi %s6061_s30, %s19_s30  }
   0x2   : > { %p289_p1 = scmp.lt.s32.totalorder %s6006_s30, 3 }
   0x4   : > { %p290_p2 = pnand %p4770_p0, %p289_p1 }
   0x5   : > { %v6074_v0 = vld [vmem:[%s6901_s1 + $0x10] sm:$0xff] (!%p290_p2)  ;;  %vm387_vm0 = vcmask (!%p290_p2), 1043456   ;;  %v338_v1 = vld [vmem:[%s6901_s1] sm:$0xff] (!%p290_p2)  ;;  %s4771_s15 = sshll.u32 (!%p290_p2), %s6067_s10, 2  ;;  %vm362_vm1 = vcmask (!%p290_p2), 31744   ;;  %v341_v10 = vld [vmem:[%s6901_s1 + $0x18] sm:$0xff] (!%p290_p2) }
   0x6   : > { %293 = sbr.rel (%p290_p2) target bundleno = 1496 (0x5d8), region = 56  ;;  %5372 = vmatprep.subr.msk.mxu0 (!%p290_p2), %vm387_vm0, %v6074_v0  ;;  %v361_v2 = vrot.slane (!%p290_p2), %v338_v1, 4  ;;  %p327_p3 = scmp.lt.s32.totalorder (!%p290_p2), %s4771_s15, 7  ;;  %v1080_v3 = vrot.slane (!%p290_p2), %v6074_v0, 4  ;;  %v6115_v11 = vld [vmem:[%s6901_s1 + $0x8] sm:$0xff] (!%p290_p2)  ;;  %v1378_v18 = vrot.slane (!%p290_p2), %v341_v10, 4 }
   0x7   : > { %5373 = vmatpush3.msk.msra.mxu0 (!%p290_p2), %vm387_vm0, %v6074_v0  ;;  %v783_v27 = vrot.slane (!%p290_p2), %v6115_v11, 4  ;;  %v342_v35 = vld [vmem:[%s6901_s1 + $0x20] sm:$0xf] (!%p290_p2)  ;;  %v6008_v60 = vmov (!%p290_p2), 4   ;;  %vm1770_vm2 = vcmask (!%p290_p2), 25600   ;;  %v6009_v61 = vmov (!%p290_p2), 0.0  }
   0x8   : > { %5316 = vmatprep.subr.msk.mxu1 (!%p290_p2), %vm387_vm0, %v361_v2  ;;  %5386 = vmatprep.subr.msk.mxu0 (!%p290_p2), %vm387_vm0, %v1080_v3  ;;  %1772 = vst.msk [vmem:[#allocation2 + $0x10] sm:$0xff] (!%p290_p2), %vm362_vm1, %v6009_v61  ;;  %1769 = vst.msk [vmem:[#allocation2] sm:$0xff] (!%p290_p2), %vm362_vm1, %v6009_v61  ;;  %vm3247_vm3 = vcmask (!%p290_p2), 64512   ;;  %vm3249_vm4 = vcmask (!%p290_p2), 58368   ;;  %p333_p4 = scmp.lt.s32.totalorder (!%p290_p2), %s6067_s10, 1 }
   0x9   : > { %5317 = vmatpush3.msk.msra.mxu1 (!%p290_p2), %vm387_vm0, %v361_v2  ;;  %5900 = vset.pattern.permute.xlu0 (!%p290_p2), %v6008_v60  ;;  %1773 = vst.msk [vmem:[#allocation2 + $0x18] sm:$0x3] (!%p290_p2), %vm1770_vm2, %v6009_v61  ;;  %1771 = vst.msk [vmem:[#allocation2 + $0x8] sm:$0x3] (!%p290_p2), %vm1770_vm2, %v6009_v61 }
   0xa   : > { %5330 = vmatprep.subr.msk.mxu1 (!%p290_p2), %vm387_vm0, %v338_v1  ;;  %5901 = vset.pattern.permute.xlu1 (!%p290_p2), %v6008_v60  ;;  %1774 = vst.msk [vmem:[#allocation2 + $0x20] sm:$0xff] (!%p290_p2), %vm362_vm1, %v6009_v61  ;;  %1776 = vst.msk [vmem:[#allocation2 + $0x30] sm:$0xff] (!%p290_p2), %vm362_vm1, %v6009_v61 }
   0xb   : > { %1775 = vst.msk [vmem:[#allocation2 + $0x28] sm:$0x3] (!%p290_p2), %vm1770_vm2, %v6009_v61  ;;  %1777 = vst.msk [vmem:[#allocation2 + $0x38] sm:$0x3] (!%p290_p2), %vm1770_vm2, %v6009_v61 }
   0xc   : > { %1778 = vst.msk [vmem:[#allocation2 + $0x40] sm:$0xff] (!%p290_p2), %vm362_vm1, %v6009_v61  ;;  %1780 = vst.msk [vmem:[#allocation2 + $0x50] sm:$0xff] (!%p290_p2), %vm362_vm1, %v6009_v61 }
   0xd   : > { %s6911_s15 = smov (!%p327_p3, %s4771_s15), 7  ;;  %1779 = vst.msk [vmem:[#allocation2 + $0x48] sm:$0x3] %vm1770_vm2, %v6009_v61  ;;  %1781 = vst.msk [vmem:[#allocation2 + $0x58] sm:$0x3] %vm1770_vm2, %v6009_v61  ;;  %s6913_s10 = smov (!%p333_p4, %s6067_s10), 1 }
   0xe   : > { %s5888_s16 = smul.u32 144, %s6911_s15  ;;  %1782 = vst.msk [vmem:[#allocation2 + $0x60] sm:$0xff] %vm362_vm1, %v6009_v61  ;;  %1784 = vst.msk [vmem:[#allocation2 + $0x70] sm:$0xff] %vm362_vm1, %v6009_v61  ;;  %s5072_s26 = sshll.u32 %s6913_s10, 6 }
   0xf   : > { %1783 = vst.msk [vmem:[#allocation2 + $0x68] sm:$0x3] %vm1770_vm2, %v6009_v61  ;;  %1785 = vst.msk [vmem:[#allocation2 + $0x78] sm:$0x3] %vm1770_vm2, %v6009_v61  ;;  %s6873_s29 = scalar_lea.vmem %s6909_s9, %s5072_s26 }
  0x10   : > { %s6092_s19 = scalar_lea.vmem %s6900_s0, %s5888_s16  ;;  %1786 = vst.msk [vmem:[#allocation2 + $0x80] sm:$0xff] %vm362_vm1, %v6009_v61  ;;  %1788 = vst.msk [vmem:[#allocation2 + $0x90] sm:$0xff] %vm362_vm1, %v6009_v61 }
  0x11   : > { %v4775_v4 = vld [vmem:[%s6092_s19 + $0x90] sm:$0xff]  ;;  %v6097_v6 = vld [vmem:[%s6092_s19 + $0xa0] sm:$0xff]  ;;  %1787 = vst.msk [vmem:[#allocation2 + $0x88] sm:$0x3] %vm1770_vm2, %v6009_v61  ;;  %1789 = vst.msk [vmem:[#allocation2 + $0x98] sm:$0x3] %vm1770_vm2, %v6009_v61 }
  0x12   : > { %v4827_v5 = vld [vmem:[%s6092_s19 + $0x1b0] sm:$0xff]  ;;  %5318 = vmatprep.mubr.msk.f32.mxu1 %vm362_vm1, %v4775_v4  ;;  %v4828_v7 = vld [vmem:[%s6092_s19 + $0x1c0] sm:$0xff]  ;;  %3253 = vst.msk [vmem:[#allocation3 + $0x20] sm:$0xff] %vm3247_vm3, %v6009_v61  ;;  %3248 = vst.msk [vmem:[#allocation3] sm:$0xff] %vm3247_vm3, %v6009_v61 }
  0x13   : > { %5374 = vmatprep.mubr.msk.f32.mxu0 %vm362_vm1, %v4827_v5  ;;  %v6103_v8 = vld [vmem:[%s6092_s19 + $0xb0] sm:$0xff]  ;;  %5319 = vmatmul.mubr.msk.f32.vlgmr.msra.gmra.mrb[0].mxu1 %vm362_vm1, %v6097_v6  ;;  %v6120_v12 = vld [vmem:[%s6092_s19 + $0xc0] sm:$0xff]  ;;  %3254 = vst.msk [vmem:[#allocation3 + $0x28] sm:$0x3] %vm3249_vm4, %v6009_v61  ;;  %3250 = vst.msk [vmem:[#allocation3 + $0x8] sm:$0x3] %vm3249_vm4, %v6009_v61 }
  0x14   : > { %v4829_v9 = vld [vmem:[%s6092_s19 + $0x1d0] sm:$0xff]  ;;  %5375 = vmatmul.mubr.msk.f32.vlgmr.msra.gmra.mrb[0].mxu0 %vm362_vm1, %v4828_v7  ;;  %5331 = vmatpush3.msk.msra.mxu1 %vm387_vm0, %v338_v1  ;;  %v4830_v13 = vld [vmem:[%s6092_s19 + $0x1e0] sm:$0xff]  ;;  %3251 = vst.msk [vmem:[#allocation3 + $0x10] sm:$0xff] %vm3247_vm3, %v6009_v61  ;;  %3255 = vst.msk [vmem:[#allocation3 + $0x30] sm:$0xff] %vm3247_vm3, %v6009_v61 }
  0x15   : > { %5387 = vmatpush3.msk.msra.mxu0 %vm387_vm0, %v1080_v3  ;;  %5321 = vmatprep.mubr.msk.f32.mxu1 %vm362_vm1, %v6103_v8  ;;  %v6127_v14 = vld [vmem:[%s6092_s19 + $0xd0] sm:$0xff]  ;;  %v4844_v15 = vld [vmem:[%s6092_s19 + $0x121] sm:$0xff]  ;;  %v4912_v3 = vld [vmem:[%s6902_s2] ss:$0 sm:$0xff]  ;;  %3252 = vst.msk [vmem:[#allocation3 + $0x18] sm:$0x3] %vm3249_vm4, %v6009_v61 }
  0x16   : > { %5377 = vmatprep.mubr.msk.f32.mxu0 %vm362_vm1, %v4829_v9  ;;  %5400 = vmatprep.subr.msk.mxu0 %vm387_vm0, %v341_v10  ;;  %v6140_v16 = vld [vmem:[%s6092_s19 + $0xe0] sm:$0xff]  ;;  %v4845_v17 = vld [vmem:[%s6092_s19 + $0x131] sm:$0xff]  ;;  %3256 = vst.msk [vmem:[#allocation3 + $0x38] sm:$0x3] %vm3249_vm4, %v6009_v61  ;;  %3258 = vst.msk [vmem:[#allocation3 + $0x48] sm:$0x3] %vm3249_vm4, %v6009_v61 }
  0x17   : > { %5344 = vmatprep.subr.msk.mxu1 %vm387_vm0, %v6115_v11  ;;  %5322 = vmatmul.mubr.msk.f32.gmra.mrb[2].mxu1 %vm362_vm1, %v6120_v12  ;;  %v6144_v19 = vld [vmem:[%s6092_s19 + $0xf0] sm:$0xff]  ;;  %v4846_v20 = vld [vmem:[%s6092_s19 + $0x141] sm:$0xff]  ;;  %3257 = vst.msk [vmem:[#allocation3 + $0x40] sm:$0xff] %vm3247_vm3, %v6009_v61  ;;  %3259 = vst.msk [vmem:[#allocation3 + $0x50] sm:$0xff] %vm3247_vm3, %v6009_v61 }
  0x18   : > { %5378 = vmatmul.mubr.msk.f32.gmra.mrb[2].mxu0 %vm362_vm1, %v4830_v13  ;;  %5324 = vmatprep.mubr.msk.f32.mxu1 %vm362_vm1, %v6127_v14  ;;  %v6154_v21 = vld [vmem:[%s6092_s19 + $0x100] sm:$0xff]  ;;  %v4847_v22 = vld [vmem:[%s6092_s19 + $0x151] sm:$0xff]  ;;  %3260 = vst.msk [vmem:[#allocation3 + $0x58] sm:$0x3] %vm3249_vm4, %v6009_v61  ;;  %3262 = vst.msk [vmem:[#allocation3 + $0x68] sm:$0x3] %vm3249_vm4, %v6009_v61 }
  0x19   : > { %5388 = vmatprep.mubr.msk.f32.mxu0 %vm362_vm1, %v4844_v15  ;;  %v343_v23 = vld [vmem:[%s6092_s19] sm:$0xff]  ;;  %v344_v25 = vld [vmem:[%s6092_s19 + $0x10] sm:$0xff]  ;;  %3261 = vst.msk [vmem:[#allocation3 + $0x60] sm:$0xff] %vm3247_vm3, %v6009_v61  ;;  %3263 = vst.msk [vmem:[#allocation3 + $0x70] sm:$0xff] %vm3247_vm3, %v6009_v61 }
  0x1a   : > { %v4848_v24 = vld [vmem:[%s6092_s19 + $0x161] sm:$0xff]  ;;  %v4849_v26 = vld [vmem:[%s6092_s19 + $0x171] sm:$0xff]  ;;  %3264 = vst.msk [vmem:[#allocation3 + $0x78] sm:$0x3] %vm3249_vm4, %v6009_v61  ;;  %3266 = vst.msk [vmem:[#allocation3 + $0x88] sm:$0x3] %vm3249_vm4, %v6009_v61 }
  0x1b   : > { %5325 = vmatmul.mubr.msk.f32.gmra.mrb[4].mxu1 %vm362_vm1, %v6140_v16  ;;  %v345_v28 = vld [vmem:[%s6092_s19 + $0x20] sm:$0xff]  ;;  %v346_v30 = vld [vmem:[%s6092_s19 + $0x30] sm:$0xff]  ;;  %3265 = vst.msk [vmem:[#allocation3 + $0x80] sm:$0xff] %vm3247_vm3, %v6009_v61  ;;  %3267 = vst.msk [vmem:[#allocation3 + $0x90] sm:$0xff] %vm3247_vm3, %v6009_v61 }
  0x1c   : > { %5389 = vmatmul.mubr.msk.f32.vlgmr.msra.gmra.mrb[0].mxu0 %vm362_vm1, %v4845_v17  ;;  %5327 = vmatprep.mubr.msk.f32.mxu1 %vm362_vm1, %v6144_v19  ;;  %v4850_v29 = vld [vmem:[%s6092_s19 + $0x181] sm:$0xff]  ;;  %v4851_v31 = vld [vmem:[%s6092_s19 + $0x191] sm:$0xff]  ;;  %3268 = vst.msk [vmem:[#allocation3 + $0x98] sm:$0x3] %vm3249_vm4, %v6009_v61 }
  0x1d   : > { %5401 = vmatpush3.msk.msra.mxu0 %vm387_vm0, %v341_v10  ;;  %5391 = vmatprep.mubr.msk.f32.mxu0 %vm362_vm1, %v4846_v20  ;;  %v347_v32 = vld [vmem:[%s6092_s19 + $0x40] sm:$0xff]  ;;  %v348_v33 = vld [vmem:[%s6092_s19 + $0x50] sm:$0xff] }
  0x1e   : > { %5414 = vmatprep.subr.msk.mxu0 %vm387_vm0, %v1378_v18  ;;  %v349_v34 = vld [vmem:[%s6092_s19 + $0x60] sm:$0xff]  ;;  %v350_v36 = vld [vmem:[%s6092_s19 + $0x70] sm:$0xff] }
  0x1f   : > { %5328 = vmatmul.mubr.msk.f32.gmra.mrb[6].mxu1 %vm362_vm1, %v6154_v21  ;;  %v626_v37 = vld [vmem:[%s6092_s19 + $0x1] sm:$0xff]  ;;  %v627_v38 = vld [vmem:[%s6092_s19 + $0x11] sm:$0xff] }
  0x20   : > { %5392 = vmatmul.mubr.msk.f32.gmra.mrb[2].mxu0 %vm362_vm1, %v4847_v22  ;;  %5332 = vmatprep.mubr.msk.f32.mxu1 %vm362_vm1, %v343_v23  ;;  %v628_v39 = vld [vmem:[%s6092_s19 + $0x21] sm:$0xff]  ;;  %v629_v40 = vld [vmem:[%s6092_s19 + $0x31] sm:$0xff] }
  0x21   : > { %5394 = vmatprep.mubr.msk.f32.mxu0 %vm362_vm1, %v4848_v24  ;;  %v4868_v41 = vld [vmem:[%s6092_s19 + $0x80] sm:$0xff]  ;;  %v631_v43 = vld [vmem:[%s6092_s19 + $0x51] sm:$0xff] }
  0x22   : > { %v630_v42 = vld [vmem:[%s6092_s19 + $0x41] sm:$0xff]  ;;  %v633_v45 = vld [vmem:[%s6092_s19 + $0x71] sm:$0xff] }
  0x23   : > { %5333 = vmatmul.mubr.msk.f32.vlgmr.msra.gmra.mrb[0].mxu1 %vm362_vm1, %v344_v25  ;;  %v632_v44 = vld [vmem:[%s6092_s19 + $0x61] sm:$0xff]  ;;  %v4811_v47 = vld [vmem:[%s6092_s19 + $0x130] sm:$0xff] }
  0x24   : > { %5395 = vmatmul.mubr.msk.f32.gmra.mrb[4].mxu0 %vm362_vm1, %v4849_v26  ;;  %5345 = vmatpush3.msk.msra.mxu1 %vm387_vm0, %v6115_v11  ;;  %v4810_v46 = vld [vmem:[%s6092_s19 + $0x120] sm:$0xff]  ;;  %v4813_v49 = vld [vmem:[%s6092_s19 + $0x150] sm:$0xff] }
  0x25   : > { %5335 = vmatprep.mubr.msk.f32.mxu1 %vm362_vm1, %v345_v28  ;;  %5397 = vmatprep.mubr.msk.f32.mxu0 %vm362_vm1, %v4850_v29  ;;  %v4812_v48 = vld [vmem:[%s6092_s19 + $0x140] sm:$0xff]  ;;  %v4885_v50 = vld [vmem:[%s6092_s19 + $0x110] sm:$0xff] }
  0x26   : > { %5358 = vmatprep.subr.msk.mxu1 %vm387_vm0, %v783_v27  ;;  %v4814_v51 = vld [vmem:[%s6092_s19 + $0x160] sm:$0xff]  ;;  %v4815_v52 = vld [vmem:[%s6092_s19 + $0x170] sm:$0xff] }
  0x27   : > { %5336 = vmatmul.mubr.msk.f32.gmra.mrb[2].mxu1 %vm362_vm1, %v346_v30  ;;  %v4816_v53 = vld [vmem:[%s6092_s19 + $0x180] sm:$0xff]  ;;  %v4817_v54 = vld [vmem:[%s6092_s19 + $0x190] sm:$0xff] }
  0x28   : > { %5398 = vmatmul.mubr.msk.f32.gmra.mrb[6].mxu0 %vm362_vm1, %v4851_v31  ;;  %5338 = vmatprep.mubr.msk.f32.mxu1 %vm362_vm1, %v347_v32  ;;  %v4831_v55 = vld [vmem:[%s6092_s19 + $0x1f0] sm:$0xff]  ;;  %v4832_v56 = vld [vmem:[%s6092_s19 + $0x200] sm:$0xff] }
  0x29   : > { %5402 = vmatprep.mubr.msk.f32.mxu0 %vm362_vm1, %v344_v25  ;;  %v4833_v57 = vld [vmem:[%s6092_s19 + $0x210] sm:$0xff]  ;;  %v4834_v58 = vld [vmem:[%s6092_s19 + $0x220] sm:$0xff] }
  0x2a   : > { %v4902_v59 = vld [vmem:[%s6092_s19 + $0x81] sm:$0xff] }
  0x2b   : > { %5339 = vmatmul.mubr.msk.f32.gmra.mrb[4].mxu1 %vm362_vm1, %v348_v33 }
  0x2c   : > { %5403 = vmatmul.mubr.msk.f32.vlgmr.msra.gmra.mrb[0].mxu0 %vm362_vm1, %v345_v28  ;;  %5341 = vmatprep.mubr.msk.f32.mxu1 %vm362_vm1, %v349_v34 }
  0x2d   : > { %5415 = vmatpush3.msk.msra.mxu0 %vm387_vm0, %v1378_v18  ;;  %5405 = vmatprep.mubr.msk.f32.mxu0 %vm362_vm1, %v346_v30 }
  0x2e   : > { %5428 = vmatprep.subr.msk.mxu0 %vm387_vm0, %v342_v35 }
  0x2f   : > { %5342 = vmatmul.mubr.msk.f32.gmra.mrb[6].mxu1 %vm362_vm1, %v350_v36 }
  0x30   : > { %5406 = vmatmul.mubr.msk.f32.gmra.mrb[2].mxu0 %vm362_vm1, %v347_v32  ;;  %5346 = vmatprep.mubr.msk.f32.mxu1 %vm362_vm1, %v626_v37 }
  0x31   : > { %5408 = vmatprep.mubr.msk.f32.mxu0 %vm362_vm1, %v348_v33 }
  0x33   : > { %5347 = vmatmul.mubr.msk.f32.vlgmr.msra.gmra.mrb[0].mxu1 %vm362_vm1, %v627_v38 }
  0x34   : > { %5409 = vmatmul.mubr.msk.f32.gmra.mrb[4].mxu0 %vm362_vm1, %v349_v34  ;;  %5359 = vmatpush3.msk.msra.mxu1 %vm387_vm0, %v783_v27 }
  0x35   : > { %5349 = vmatprep.mubr.msk.f32.mxu1 %vm362_vm1, %v628_v39  ;;  %5411 = vmatprep.mubr.msk.f32.mxu0 %vm362_vm1, %v350_v36 }
  0x36   : > { %5694 = vmatprep.subr.msk.mxu1 %vm387_vm0, %v6074_v0 }
  0x37   : > { %5350 = vmatmul.mubr.msk.f32.gmra.mrb[2].mxu1 %vm362_vm1, %v629_v40 }
  0x38   : > { %5412 = vmatmul.mubr.msk.f32.gmra.mrb[6].mxu0 %vm362_vm1, %v4868_v41  ;;  %5352 = vmatprep.mubr.msk.f32.mxu1 %vm362_vm1, %v630_v42 }
  0x39   : > { %5416 = vmatprep.mubr.msk.f32.mxu0 %vm362_vm1, %v6097_v6 }
  0x3b   : > { %5353 = vmatmul.mubr.msk.f32.gmra.mrb[4].mxu1 %vm362_vm1, %v631_v43 }
  0x3c   : > { %5417 = vmatmul.mubr.msk.f32.vlgmr.msra.gmra.mrb[0].mxu0 %vm362_vm1, %v6103_v8  ;;  %5355 = vmatprep.mubr.msk.f32.mxu1 %vm362_vm1, %v632_v44 }
  0x3d   : > { %5429 = vmatpush3.msk.msra.mxu0 %vm387_vm0, %v342_v35  ;;  %5419 = vmatprep.mubr.msk.f32.mxu0 %vm362_vm1, %v6120_v12 }
  0x3f   : > { %5356 = vmatmul.mubr.msk.f32.gmra.mrb[6].mxu1 %vm362_vm1, %v633_v45 }
  0x40   : > { %5420 = vmatmul.mubr.msk.f32.gmra.mrb[2].mxu0 %vm362_vm1, %v6127_v14  ;;  %5360 = vmatprep.mubr.msk.f32.mxu1 %vm362_vm1, %v4810_v46 }
  0x41   : > { %5422 = vmatprep.mubr.msk.f32.mxu0 %vm362_vm1, %v6140_v16 }
  0x43   : > { %5361 = vmatmul.mubr.msk.f32.vlgmr.msra.gmra.mrb[0].mxu1 %vm362_vm1, %v4811_v47 }
  0x44   : > { %5423 = vmatmul.mubr.msk.f32.gmra.mrb[4].mxu0 %vm362_vm1, %v6144_v19  ;;  %5695 = vmatpush3.msk.msra.mxu1 %vm387_vm0, %v6074_v0 }
  0x45   : > { %5363 = vmatprep.mubr.msk.f32.mxu1 %vm362_vm1, %v4812_v48  ;;  %5425 = vmatprep.mubr.msk.f32.mxu0 %vm362_vm1, %v6154_v21 }
  0x47   : > { %5364 = vmatmul.mubr.msk.f32.gmra.mrb[2].mxu1 %vm362_vm1, %v4813_v49 }
  0x48   : > { %5426 = vmatmul.mubr.msk.f32.gmra.mrb[6].mxu0 %vm362_vm1, %v4885_v50  ;;  %5366 = vmatprep.mubr.msk.f32.mxu1 %vm362_vm1, %v4814_v51 }
  0x49   : > { %5430 = vmatprep.mubr.msk.f32.mxu0 %vm362_vm1, %v627_v38 }
  0x4b   : > { %5367 = vmatmul.mubr.msk.f32.gmra.mrb[4].mxu1 %vm362_vm1, %v4815_v52 }
  0x4c   : > { %5431 = vmatmul.mubr.msk.f32.vlgmr.msra.gmra.mrb[0].mxu0 %vm362_vm1, %v628_v39  ;;  %5369 = vmatprep.mubr.msk.f32.mxu1 %vm362_vm1, %v4816_v53 }
  0x4d   : > { %5433 = vmatprep.mubr.msk.f32.mxu0 %vm362_vm1, %v629_v40 }
  0x4f   : > { %5370 = vmatmul.mubr.msk.f32.gmra.mrb[6].mxu1 %vm362_vm1, %v4817_v54 }
  0x50   : > { %5434 = vmatmul.mubr.msk.f32.gmra.mrb[2].mxu0 %vm362_vm1, %v630_v42  ;;  %5380 = vmatprep.mubr.msk.f32.mxu1 %vm362_vm1, %v4831_v55 }
  0x51   : > { %5436 = vmatprep.mubr.msk.f32.mxu0 %vm362_vm1, %v631_v43 }
  0x53   : > { %5381 = vmatmul.mubr.msk.f32.vlgmr.msra.gmra.mrb[4].mxu1 %vm362_vm1, %v4832_v56 }
  0x54   : > { %5437 = vmatmul.mubr.msk.f32.gmra.mrb[4].mxu0 %vm362_vm1, %v632_v44  ;;  %5383 = vmatprep.mubr.msk.f32.mxu1 %vm362_vm1, %v4833_v57 }
  0x55   : > { %5439 = vmatprep.mubr.msk.f32.mxu0 %vm362_vm1, %v633_v45 }
  0x57   : > { %5384 = vmatmul.mubr.msk.f32.gmra.mrb[6].mxu1 %vm362_vm1, %v4834_v58 }
  0x58   : > { %5440 = vmatmul.mubr.msk.f32.gmra.mrb[6].mxu0 %vm362_vm1, %v4902_v59 }
 0x116   : > { %v5362_v62 = vpop.f32.mrb[0].mxu1 }
 0x117   : > { %v876_v63 = vpop.f32.mrb[1].mxu1 }
 0x11a   : > { %v5365_v0 = vpop.f32.mrb[2].mxu1 }
 0x11b   : > { %v886_v1 = vpop.f32.mrb[3].mxu1 }
 0x11f   : > { %v5432_v2 = vpop.f32.mrb[0].mxu0 }
 0x120   : > { %v5696_v4 = vadd.f32 %v5432_v2, %v5362_v62  ;;  %v1619_v5 = vpop.f32.mrb[1].mxu0  ;;  %v1799_v2 = vld [vmem:[%s6903_s3] sm:$0xff] }
 0x121   : > { %v5697_v6 = vadd.f32 %v1619_v5, %v876_v63 }
 0x122   : > { %v6318_v7 = vadd.f32 %v5696_v4, %v4912_v3  ;;  %v1821_v4 = vrot.slane %v1799_v2, 4 }
 0x123   : > { %v6320_v8 = vadd.f32 %v5697_v6, %v4912_v3  ;;  %v5435_v9 = vpop.f32.mrb[2].mxu0 }
 0x124   : > { %v1682_v10 = vsub.f32 0.0, %v6318_v7  ;;  %v5698_v11 = vadd.f32 %v5435_v9, %v5365_v0  ;;  %v1629_v12 = vpop.f32.mrb[3].mxu0  ;;  %5442 = vmatprep.subr.msk.mxu1 %vm387_vm0, %v1821_v4  ;;  %v1812_v9 = vld [vmem:[#allocation2 + $0x1] sm:$0xff] }
 0x125   : > { %v1681_v13 = vsub.f32 0.0, %v6320_v8  ;;  %v5699_v14 = vadd.f32 %v1629_v12, %v886_v1  ;;  %5443 = vmatpush3.msk.msra.mxu1 %vm387_vm0, %v1821_v4  ;;  %5444 = vmatprep.mubr.msk.f32.mxu1 %vm362_vm1, %v1812_v9 }
 0x126   : > { %v1691_v15 = vmul.f32 1.442695, %v1682_v10  ;;  %v6324_v16 = vadd.f32 %v5698_v11, %v4912_v3  ;;  %v5382_v19 = vpop.f32.mrb[4].mxu1  ;;  %5456 = vmatprep.subr.msk.mxu1 %vm387_vm0, %v1799_v2 }
 0x127   : > { %v1689_v17 = vmul.f32 1.442695, %v1681_v13  ;;  %v6326_v18 = vadd.f32 %v5699_v14, %v4912_v3  ;;  %v5438_v20 = vpop.f32.mrb[4].mxu0  ;;  %v1045_v23 = vpop.f32.mrb[5].mxu1 }
 0x128   : > { %5904 = vpow2.f32 %v1691_v15  ;;  %v1684_v21 = vsub.f32 0.0, %v6324_v16  ;;  %v5700_v22 = vadd.f32 %v5438_v20, %v5382_v19  ;;  %v1639_v24 = vpop.f32.mrb[5].mxu0 }
 0x129   : > { %5906 = vpow2.f32 %v1689_v17  ;;  %v1683_v25 = vsub.f32 0.0, %v6326_v18  ;;  %v5701_v26 = vadd.f32 %v1639_v24, %v1045_v23 }
 0x12a   : > { %v1695_v27 = vmul.f32 1.442695, %v1684_v21  ;;  %v6330_v28 = vadd.f32 %v5700_v22, %v4912_v3  ;;  %v5385_v31 = vpop.f32.mrb[6].mxu1 }
 0x12b   : > { %v1693_v29 = vmul.f32 1.442695, %v1683_v25  ;;  %v6332_v30 = vadd.f32 %v5701_v26, %v4912_v3  ;;  %v5441_v32 = vpop.f32.mrb[6].mxu0  ;;  %v1055_v35 = vpop.f32.mrb[7].mxu1 }
 0x12c   : > { %5908 = vpow2.f32 %v1695_v27  ;;  %v1686_v33 = vsub.f32 0.0, %v6330_v28  ;;  %v5702_v34 = vadd.f32 %v5441_v32, %v5385_v31  ;;  %v1649_v36 = vpop.f32.mrb[7].mxu0 }
 0x12d   : > { %5910 = vpow2.f32 %v1693_v29  ;;  %v1685_v37 = vsub.f32 0.0, %v6332_v30  ;;  %v5703_v38 = vadd.f32 %v1649_v36, %v1055_v35 }
 0x12e   : > { %v1699_v39 = vmul.f32 1.442695, %v1686_v33  ;;  %v6336_v40 = vadd.f32 %v5702_v34, %v4912_v3  ;;  %v1804_v34 = vld [vmem:[#allocation2] sm:$0xff] }
 0x12f   : > { %v1697_v41 = vmul.f32 1.442695, %v1685_v37  ;;  %v6338_v42 = vadd.f32 %v5703_v38, %v4912_v3 }
 0x130   : > { %5912 = vpow2.f32 %v1699_v39  ;;  %v1688_v43 = vsub.f32 0.0, %v6336_v40 }
 0x131   : > { %5914 = vpow2.f32 %v1697_v41  ;;  %v1687_v44 = vsub.f32 0.0, %v6338_v42 }
 0x132   : > { %v5905_v45 = vpop.eup %5904  ;;  %v1703_v46 = vmul.f32 1.442695, %v1688_v43  ;;  %v2084_v43 = vld [vmem:[#allocation2 + $0x2] sm:$0xff] }
 0x133   : > { %v5907_v47 = vpop.eup %5906  ;;  %v1701_v48 = vmul.f32 1.442695, %v1687_v44  ;;  %v1706_v50 = vadd.f32 1.0, %v5905_v45 }
 0x134   : > { %v1705_v49 = vadd.f32 1.0, %v5907_v47  ;;  %5916 = vpow2.f32 %v1703_v46  ;;  %v1801_v46 = vld [vmem:[%s6903_s3 + $0x10] sm:$0xff] }
 0x136   : > { %v5909_v51 = vpop.eup %5908  ;;  %5918 = vrcp.f32 %v1705_v49 }
 0x137   : > { %v5911_v52 = vpop.eup %5910  ;;  %5920 = vpow2.f32 %v1701_v48  ;;  %v1708_v54 = vadd.f32 1.0, %v5909_v51 }
 0x138   : > { %v1707_v53 = vadd.f32 1.0, %v5911_v52  ;;  %5922 = vrcp.f32 %v1706_v50 }
 0x13a   : > { %v5913_v55 = vpop.eup %5912  ;;  %5924 = vrcp.f32 %v1707_v53  ;;  %v2536_v53 = vrot.slane %v1801_v46, 4 }
 0x13b   : > { %v5915_v56 = vpop.eup %5914  ;;  %5926 = vrcp.f32 %v1708_v54  ;;  %v1710_v58 = vadd.f32 1.0, %v5913_v55  ;;  %v1802_v55 = vld [vmem:[%s6903_s3 + $0x18] sm:$0xff] }
 0x13c   : > { %v1709_v57 = vadd.f32 1.0, %v5915_v56 }
 0x13e   : > { %5928 = vrcp.f32 %v1709_v57  ;;  %v5917_v59 = vpop.eup %5916  ;;  %v2833_v57 = vrot.slane %v1802_v55, 4 }
 0x13f   : > { %5930 = vrcp.f32 %v1710_v58  ;;  %v1712_v63 = vadd.f32 1.0, %v5917_v59  ;;  %v1803_v59 = vld [vmem:[%s6903_s3 + $0x20] sm:$0xf] }
 0x140   : > { %v5919_v60 = vpop.eup %5918 }
 0x141   : > { %v5921_v62 = vpop.eup %5920  ;;  %1723 = vperm.xlu0 %5900, %v5919_v60   ;;  %v2684_v60 = vld [vmem:[#allocation2 + $0x90] sm:$0xff] }
 0x142   : > { %v1711_v0 = vadd.f32 1.0, %v5921_v62  ;;  %v5923_v1 = vpop.eup %5922  ;;  %v2832_v62 = vld [vmem:[#allocation2 + $0x91] sm:$0xff] }
 0x144   : > { %v5925_v3 = vpop.eup %5924  ;;  %5932 = vrcp.f32 %v1711_v0  ;;  %v6010_v0 = vmov 8  }
 0x145   : > { %1728 = vperm.xlu0 %5900, %v5923_v1   ;;  %1733 = vperm.xlu1 %5901, %v5925_v3   ;;  %5934 = vrcp.f32 %v1712_v63  ;;  %v5927_v5 = vpop.eup %5926  ;;  %v2980_v63 = vld [vmem:[#allocation2 + $0x92] sm:$0xff]  ;;  %v3279_v1 = vld [vmem:[%s6906_s6 + $0x8] sm:$0xff] }
 0x146   : > { %5568 = vmatprep.subr.mxu0 %v3279_v1 }
 0x147   : > { %5569 = vmatpush3.msra.mxu0 %v3279_v1 }
 0x148   : > { %v5929_v6 = vpop.eup %5928 }
 0x149   : > { %1738 = vperm.xlu1 %5901, %v5927_v5   ;;  %1743 = vperm.xlu0 %5900, %v5929_v6   ;;  %v5931_v10 = vpop.eup %5930 }
 0x14d   : > { %1748 = vperm.xlu1 %5901, %v5931_v10  }
 0x14e   : > { %v5933_v11 = vpop.eup %5932 }
 0x14f   : > { %1753 = vperm.xlu0 %5900, %v5933_v11   ;;  %v5935_v12 = vpop.eup %5934 }
 0x151   : > { %1758 = vperm.xlu1 %5901, %v5935_v12  }
 0x153   : > { %5902 = vset.pattern.permute.xlu0 %v6010_v0 }
 0x155   : > { %5903 = vset.pattern.permute.xlu1 %v6010_v0 }
 0x1c0   : > { %v1724_v13 = vpop.permute.xlu0 %1723 }
 0x1c1   : > { %v1761_v14 = vmul.f32 %v1724_v13, %v6320_v8  ;;  %v1800_v8 = vld [vmem:[%s6903_s3 + $0x8] sm:$0xff] }
 0x1c2   : > { %v2240_v36 = vrot.slane %v1800_v8, 4 }
 0x1c3   : > { %1791 = vst.msk [vmem:[#allocation2 + $0x11] sm:$0xff] %vm362_vm1, %v1761_v14 }
 0x1c4   : > { %v1729_v15 = vpop.permute.xlu0 %1728  ;;  %v1734_v17 = vpop.permute.xlu1 %1733 }
 0x1c5   : > { %v1762_v19 = vmul.f32 %v1729_v15, %v6318_v7  ;;  %v1763_v20 = vmul.f32 %v1734_v17, %v6326_v18 }
 0x1c7   : > { %1792 = vst.msk [vmem:[#allocation2 + $0x21] sm:$0xff] %vm362_vm1, %v1762_v19  ;;  %1793 = vst.msk [vmem:[#allocation2 + $0x31] sm:$0xff] %vm362_vm1, %v1763_v20 }
 0x1c8   : > { %v1739_v21 = vpop.permute.xlu1 %1738  ;;  %v1744_v22 = vpop.permute.xlu0 %1743 }
 0x1c9   : > { %v1764_v23 = vmul.f32 %v1739_v21, %v6324_v16  ;;  %v1765_v24 = vmul.f32 %v1744_v22, %v6332_v30 }
 0x1ca   : > { %v6357_v25 = vld [vmem:[#allocation2 + $0x11] sm:$0xff] }
 0x1cb   : > { %1794 = vst.msk [vmem:[#allocation2 + $0x41] sm:$0xff] %vm362_vm1, %v1764_v23  ;;  %1795 = vst.msk [vmem:[#allocation2 + $0x51] sm:$0xff] %vm362_vm1, %v1765_v24  ;;  %5445 = vmatmul.mubr.msk.f32.vlgmr.msra.gmra.mrb[8].mxu1 %vm362_vm1, %v6357_v25  ;;  %v1805_v37 = vld [vmem:[#allocation2 + $0x10] sm:$0xff] }
 0x1cc   : > { %5457 = vmatpush3.msk.msra.mxu1 %vm387_vm0, %v1799_v2  ;;  %v1749_v7 = vpop.permute.xlu1 %1748  ;;  %v2085_v45 = vld [vmem:[#allocation2 + $0x12] sm:$0xff]  ;;  %v4994_v2 = vld [vmem:[%s6904_s4] ss:$0 sm:$0xff] }
 0x1cd   : > { %v1766_v16 = vmul.f32 %v1749_v7, %v6330_v28  ;;  %5470 = vmatprep.subr.msk.mxu1 %vm387_vm0, %v1800_v8 }
 0x1ce   : > { %v1754_v18 = vpop.permute.xlu0 %1753  ;;  %v6369_v26 = vld [vmem:[#allocation2 + $0x21] sm:$0xff]  ;;  %v6371_v27 = vld [vmem:[#allocation2 + $0x31] sm:$0xff] }
 0x1cf   : > { %1796 = vst.msk [vmem:[#allocation2 + $0x61] sm:$0xff] %vm362_vm1, %v1766_v16  ;;  %v1767_v29 = vmul.f32 %v1754_v18, %v6338_v42  ;;  %5447 = vmatprep.mubr.msk.f32.mxu1 %vm362_vm1, %v6369_v26  ;;  %v6400_v38 = vld [vmem:[#allocation2 + $0x20] sm:$0xff]  ;;  %v6406_v39 = vld [vmem:[#allocation2 + $0x30] sm:$0xff] }
 0x1d0   : > { %5448 = vmatmul.mubr.msk.f32.gmra.mrb[10].mxu1 %vm362_vm1, %v6371_v27  ;;  %v1759_v30 = vpop.permute.xlu1 %1758  ;;  %v6431_v47 = vld [vmem:[#allocation2 + $0x22] sm:$0xff]  ;;  %v6437_v48 = vld [vmem:[#allocation2 + $0x32] sm:$0xff] }
 0x1d1   : > { %1797 = vst.msk [vmem:[#allocation2 + $0x71] sm:$0xff] %vm362_vm1, %v1767_v29  ;;  %v1768_v28 = vmul.f32 %v1759_v30, %v6336_v40 }
 0x1d2   : > { %v6381_v31 = vld [vmem:[#allocation2 + $0x41] sm:$0xff]  ;;  %v6383_v32 = vld [vmem:[#allocation2 + $0x51] sm:$0xff] }
 0x1d3   : > { %1798 = vst.msk [vmem:[#allocation2 + $0x81] sm:$0xff] %vm362_vm1, %v1768_v28  ;;  %5450 = vmatprep.mubr.msk.f32.mxu1 %vm362_vm1, %v6381_v31  ;;  %v6410_v40 = vld [vmem:[#allocation2 + $0x40] sm:$0xff]  ;;  %v6414_v41 = vld [vmem:[#allocation2 + $0x50] sm:$0xff] }
 0x1d4   : > { %5451 = vmatmul.mubr.msk.f32.gmra.mrb[12].mxu1 %vm362_vm1, %v6383_v32  ;;  %v6441_v49 = vld [vmem:[#allocation2 + $0x42] sm:$0xff]  ;;  %v6445_v50 = vld [vmem:[#allocation2 + $0x52] sm:$0xff] }
 0x1d6   : > { %v6390_v33 = vld [vmem:[#allocation2 + $0x61] sm:$0xff] }
 0x1d7   : > { %5453 = vmatprep.mubr.msk.f32.mxu1 %vm362_vm1, %v6390_v33  ;;  %v6418_v42 = vld [vmem:[#allocation2 + $0x60] sm:$0xff] }
 0x1d8   : > { %v6394_v35 = vld [vmem:[#allocation2 + $0x71] sm:$0xff]  ;;  %v6449_v51 = vld [vmem:[#allocation2 + $0x62] sm:$0xff] }
 0x1d9   : > { %5454 = vmatmul.mubr.msk.f32.gmra.mrb[14].mxu1 %vm362_vm1, %v6394_v35  ;;  %v6422_v44 = vld [vmem:[#allocation2 + $0x70] sm:$0xff] }
 0x1da   : > { %5458 = vmatprep.mubr.msk.f32.mxu1 %vm362_vm1, %v1804_v34  ;;  %v6453_v52 = vld [vmem:[#allocation2 + $0x72] sm:$0xff]  ;;  %v2239_v54 = vld [vmem:[#allocation2 + $0x80] sm:$0xff] }
 0x1db   : > { %v2387_v56 = vld [vmem:[#allocation2 + $0x81] sm:$0xff] }
 0x1dc   : > { %v2535_v58 = vld [vmem:[#allocation2 + $0x82] sm:$0xff] }
 0x1dd   : > { %5459 = vmatmul.mubr.msk.f32.vlgmr.msra.gmra.mrb[8].mxu1 %vm362_vm1, %v1805_v37 }
 0x1de   : > { %5471 = vmatpush3.msk.msra.mxu1 %vm387_vm0, %v1800_v8  ;;  %5461 = vmatprep.mubr.msk.f32.mxu1 %vm362_vm1, %v6400_v38 }
 0x1df   : > { %5484 = vmatprep.subr.msk.mxu1 %vm387_vm0, %v2240_v36 }
 0x1e1   : > { %5462 = vmatmul.mubr.msk.f32.gmra.mrb[10].mxu1 %vm362_vm1, %v6406_v39 }
 0x1e2   : > { %5464 = vmatprep.mubr.msk.f32.mxu1 %vm362_vm1, %v6410_v40 }
 0x1e5   : > { %5465 = vmatmul.mubr.msk.f32.gmra.mrb[12].mxu1 %vm362_vm1, %v6414_v41 }
 0x1e6   : > { %5467 = vmatprep.mubr.msk.f32.mxu1 %vm362_vm1, %v6418_v42 }
 0x1e9   : > { %5468 = vmatmul.mubr.msk.f32.gmra.mrb[14].mxu1 %vm362_vm1, %v6422_v44 }
 0x1ea   : > { %5472 = vmatprep.mubr.msk.f32.mxu1 %vm362_vm1, %v2084_v43 }
 0x1ed   : > { %5473 = vmatmul.mubr.msk.f32.vlgmr.msra.gmra.mrb[8].mxu1 %vm362_vm1, %v2085_v45 }
 0x1ee   : > { %5485 = vmatpush3.msk.msra.mxu1 %vm387_vm0, %v2240_v36  ;;  %5475 = vmatprep.mubr.msk.f32.mxu1 %vm362_vm1, %v6431_v47 }
 0x1ef   : > { %5498 = vmatprep.subr.msk.mxu1 %vm387_vm0, %v1801_v46 }
 0x1f1   : > { %5476 = vmatmul.mubr.msk.f32.gmra.mrb[10].mxu1 %vm362_vm1, %v6437_v48 }
 0x1f2   : > { %5478 = vmatprep.mubr.msk.f32.mxu1 %vm362_vm1, %v6441_v49 }
 0x1f5   : > { %5479 = vmatmul.mubr.msk.f32.gmra.mrb[12].mxu1 %vm362_vm1, %v6445_v50 }
 0x1f6   : > { %5481 = vmatprep.mubr.msk.f32.mxu1 %vm362_vm1, %v6449_v51 }
 0x1f9   : > { %5482 = vmatmul.mubr.msk.f32.gmra.mrb[14].mxu1 %vm362_vm1, %v6453_v52 }
 0x1fa   : > { %5486 = vmatprep.mubr.msk.f32.mxu1 %vm362_vm1, %v1805_v37 }
 0x1fd   : > { %5487 = vmatmul.mubr.msk.f32.vlgmr.msra.gmra.mrb[8].mxu1 %vm362_vm1, %v6400_v38 }
 0x1fe   : > { %5499 = vmatpush3.msk.msra.mxu1 %vm387_vm0, %v1801_v46  ;;  %5489 = vmatprep.mubr.msk.f32.mxu1 %vm362_vm1, %v6406_v39 }
 0x1ff   : > { %5512 = vmatprep.subr.msk.mxu1 %vm387_vm0, %v2536_v53 }
 0x201   : > { %5490 = vmatmul.mubr.msk.f32.gmra.mrb[10].mxu1 %vm362_vm1, %v6410_v40 }
 0x202   : > { %5492 = vmatprep.mubr.msk.f32.mxu1 %vm362_vm1, %v6414_v41 }
 0x205   : > { %5493 = vmatmul.mubr.msk.f32.gmra.mrb[12].mxu1 %vm362_vm1, %v6418_v42 }
 0x206   : > { %5495 = vmatprep.mubr.msk.f32.mxu1 %vm362_vm1, %v6422_v44 }
 0x209   : > { %5496 = vmatmul.mubr.msk.f32.gmra.mrb[14].mxu1 %vm362_vm1, %v2239_v54 }
 0x20a   : > { %5500 = vmatprep.mubr.msk.f32.mxu1 %vm362_vm1, %v6357_v25 }
 0x20d   : > { %5501 = vmatmul.mubr.msk.f32.vlgmr.msra.gmra.mrb[8].mxu1 %vm362_vm1, %v6369_v26 }
 0x20e   : > { %5513 = vmatpush3.msk.msra.mxu1 %vm387_vm0, %v2536_v53  ;;  %5503 = vmatprep.mubr.msk.f32.mxu1 %vm362_vm1, %v6371_v27 }
 0x20f   : > { %5526 = vmatprep.subr.msk.mxu1 %vm387_vm0, %v1802_v55 }
 0x211   : > { %5504 = vmatmul.mubr.msk.f32.gmra.mrb[10].mxu1 %vm362_vm1, %v6381_v31 }
 0x212   : > { %5506 = vmatprep.mubr.msk.f32.mxu1 %vm362_vm1, %v6383_v32 }
 0x215   : > { %5507 = vmatmul.mubr.msk.f32.gmra.mrb[12].mxu1 %vm362_vm1, %v6390_v33 }
 0x216   : > { %5509 = vmatprep.mubr.msk.f32.mxu1 %vm362_vm1, %v6394_v35 }
 0x219   : > { %5510 = vmatmul.mubr.msk.f32.gmra.mrb[14].mxu1 %vm362_vm1, %v2387_v56 }
 0x21a   : > { %5514 = vmatprep.mubr.msk.f32.mxu1 %vm362_vm1, %v2085_v45 }
 0x21d   : > { %5515 = vmatmul.mubr.msk.f32.vlgmr.msra.gmra.mrb[8].mxu1 %vm362_vm1, %v6431_v47 }
 0x21e   : > { %5527 = vmatpush3.msk.msra.mxu1 %vm387_vm0, %v1802_v55  ;;  %5517 = vmatprep.mubr.msk.f32.mxu1 %vm362_vm1, %v6437_v48 }
 0x21f   : > { %5540 = vmatprep.subr.msk.mxu1 %vm387_vm0, %v2833_v57 }
 0x221   : > { %5518 = vmatmul.mubr.msk.f32.gmra.mrb[10].mxu1 %vm362_vm1, %v6441_v49 }
 0x222   : > { %5520 = vmatprep.mubr.msk.f32.mxu1 %vm362_vm1, %v6445_v50 }
 0x225   : > { %5521 = vmatmul.mubr.msk.f32.gmra.mrb[12].mxu1 %vm362_vm1, %v6449_v51 }
 0x226   : > { %5523 = vmatprep.mubr.msk.f32.mxu1 %vm362_vm1, %v6453_v52 }
 0x229   : > { %5524 = vmatmul.mubr.msk.f32.gmra.mrb[14].mxu1 %vm362_vm1, %v2535_v58 }
 0x22a   : > { %5528 = vmatprep.mubr.msk.f32.mxu1 %vm362_vm1, %v6400_v38 }
 0x22d   : > { %5529 = vmatmul.mubr.msk.f32.vlgmr.msra.gmra.mrb[8].mxu1 %vm362_vm1, %v6406_v39 }
 0x22e   : > { %5541 = vmatpush3.msk.msra.mxu1 %vm387_vm0, %v2833_v57  ;;  %5531 = vmatprep.mubr.msk.f32.mxu1 %vm362_vm1, %v6410_v40 }
 0x22f   : > { %5554 = vmatprep.subr.msk.mxu1 %vm387_vm0, %v1803_v59 }
 0x231   : > { %5532 = vmatmul.mubr.msk.f32.gmra.mrb[10].mxu1 %vm362_vm1, %v6414_v41 }
 0x232   : > { %5534 = vmatprep.mubr.msk.f32.mxu1 %vm362_vm1, %v6418_v42 }
 0x235   : > { %5535 = vmatmul.mubr.msk.f32.gmra.mrb[12].mxu1 %vm362_vm1, %v6422_v44 }
 0x236   : > { %5537 = vmatprep.mubr.msk.f32.mxu1 %vm362_vm1, %v2239_v54 }
 0x239   : > { %5538 = vmatmul.mubr.msk.f32.gmra.mrb[14].mxu1 %vm362_vm1, %v2684_v60  ;;  %v4995_v60 = vld [vmem:[%s6905_s5] ss:$0 sm:$0xff] }
 0x23a   : > { %5542 = vmatprep.mubr.msk.f32.mxu1 %vm362_vm1, %v6369_v26 }
 0x23d   : > { %5543 = vmatmul.mubr.msk.f32.vlgmr.msra.gmra.mrb[8].mxu1 %vm362_vm1, %v6371_v27 }
 0x23e   : > { %5555 = vmatpush3.msk.msra.mxu1 %vm387_vm0, %v1803_v59  ;;  %5545 = vmatprep.mubr.msk.f32.mxu1 %vm362_vm1, %v6381_v31  ;;  %v3278_v59 = vld [vmem:[%s6906_s6] sm:$0xff] }
 0x23f   : > { %5582 = vmatprep.subr.mxu0 %v3278_v59 }
 0x241   : > { %5546 = vmatmul.mubr.msk.f32.gmra.mrb[10].mxu1 %vm362_vm1, %v6383_v32 }
 0x242   : > { %5548 = vmatprep.mubr.msk.f32.mxu1 %vm362_vm1, %v6390_v33 }
 0x245   : > { %5549 = vmatmul.mubr.msk.f32.gmra.mrb[12].mxu1 %vm362_vm1, %v6394_v35 }
 0x246   : > { %5551 = vmatprep.mubr.msk.f32.mxu1 %vm362_vm1, %v2387_v56 }
 0x249   : > { %5552 = vmatmul.mubr.msk.f32.gmra.mrb[14].mxu1 %vm362_vm1, %v2832_v62 }
 0x24a   : > { %5556 = vmatprep.mubr.msk.f32.mxu1 %vm362_vm1, %v6431_v47 }
 0x24d   : > { %5557 = vmatmul.mubr.msk.f32.vlgmr.msra.gmra.mrb[8].mxu1 %vm362_vm1, %v6437_v48 }
 0x24e   : > { %5559 = vmatprep.mubr.msk.f32.mxu1 %vm362_vm1, %v6441_v49 }
 0x251   : > { %5560 = vmatmul.mubr.msk.f32.gmra.mrb[10].mxu1 %vm362_vm1, %v6445_v50 }
 0x252   : > { %5562 = vmatprep.mubr.msk.f32.mxu1 %vm362_vm1, %v6449_v51 }
 0x255   : > { %5563 = vmatmul.mubr.msk.f32.gmra.mrb[12].mxu1 %vm362_vm1, %v6453_v52 }
 0x256   : > { %5565 = vmatprep.mubr.msk.f32.mxu1 %vm362_vm1, %v2535_v58  ;;  %v3295_v58 = vld [vmem:[#allocation3 + $0x1] sm:$0xff] }
 0x257   : > { %5570 = vmatprep.mubr.msk.f32.mxu0 %vm3247_vm3, %v3295_v58 }
 0x259   : > { %5566 = vmatmul.mubr.msk.f32.gmra.mrb[14].mxu1 %vm362_vm1, %v2980_v63 }
 0x320   : > { %v5558_v3 = vpop.f32.mrb[8].mxu1 }
 0x321   : > { %v6603_v4 = vadd.f32 %v5558_v3, %v4994_v2  ;;  %v3074_v5 = vpop.f32.mrb[9].mxu1 }
 0x322   : > { %v6605_v6 = vadd.f32 %v4994_v2, %v3074_v5 }
 0x323   : > { %v3137_v9 = vsub.f32 0.0, %v6603_v4 }
 0x324   : > { %v3136_v10 = vsub.f32 0.0, %v6605_v6  ;;  %v5561_v11 = vpop.f32.mrb[10].mxu1 }
 0x325   : > { %v3146_v12 = vmul.f32 1.442695, %v3137_v9  ;;  %v6609_v13 = vadd.f32 %v5561_v11, %v4994_v2  ;;  %v3084_v61 = vpop.f32.mrb[11].mxu1 }
 0x326   : > { %v3144_v14 = vmul.f32 1.442695, %v3136_v10  ;;  %v6611_v15 = vadd.f32 %v4994_v2, %v3084_v61 }
 0x327   : > { %5936 = vpow2.f32 %v3146_v12  ;;  %v3139_v17 = vsub.f32 0.0, %v6609_v13 }
 0x328   : > { %5938 = vpow2.f32 %v3144_v14  ;;  %v3138_v19 = vsub.f32 0.0, %v6611_v15  ;;  %v5564_v20 = vpop.f32.mrb[12].mxu1 }
 0x329   : > { %v3150_v21 = vmul.f32 1.442695, %v3139_v17  ;;  %v6615_v22 = vadd.f32 %v5564_v20, %v4994_v2  ;;  %v3094_v23 = vpop.f32.mrb[13].mxu1 }
 0x32a   : > { %v3148_v24 = vmul.f32 1.442695, %v3138_v19  ;;  %v6617_v25 = vadd.f32 %v4994_v2, %v3094_v23 }
 0x32b   : > { %5940 = vpow2.f32 %v3150_v21  ;;  %v3141_v8 = vsub.f32 0.0, %v6615_v22 }
 0x32c   : > { %5942 = vpow2.f32 %v3148_v24  ;;  %v3140_v7 = vsub.f32 0.0, %v6617_v25  ;;  %v5567_v16 = vpop.f32.mrb[14].mxu1 }
 0x32d   : > { %v3154_v18 = vmul.f32 1.442695, %v3141_v8  ;;  %v6621_v26 = vadd.f32 %v5567_v16, %v4994_v2  ;;  %v3104_v27 = vpop.f32.mrb[15].mxu1 }
 0x32e   : > { %v3152_v29 = vmul.f32 1.442695, %v3140_v7  ;;  %v6623_v30 = vadd.f32 %v4994_v2, %v3104_v27 }
 0x32f   : > { %5944 = vpow2.f32 %v3154_v18  ;;  %v3143_v28 = vsub.f32 0.0, %v6621_v26 }
 0x330   : > { %5946 = vpow2.f32 %v3152_v29  ;;  %v3142_v31 = vsub.f32 0.0, %v6623_v30 }
 0x331   : > { %v5937_v32 = vpop.eup %5936  ;;  %v3158_v33 = vmul.f32 1.442695, %v3143_v28 }
 0x332   : > { %v5939_v34 = vpop.eup %5938  ;;  %v3161_v35 = vadd.f32 1.0, %v5937_v32  ;;  %v3156_v36 = vmul.f32 1.442695, %v3142_v31 }
 0x333   : > { %v3160_v37 = vadd.f32 1.0, %v5939_v34  ;;  %5948 = vpow2.f32 %v3158_v33 }
 0x334   : > { %5950 = vrcp.f32 %v3161_v35 }
 0x335   : > { %v5941_v38 = vpop.eup %5940  ;;  %5952 = vrcp.f32 %v3160_v37 }
 0x336   : > { %v5943_v39 = vpop.eup %5942  ;;  %v3163_v40 = vadd.f32 1.0, %v5941_v38  ;;  %5954 = vpow2.f32 %v3156_v36  ;;  %v3287_v36 = vld [vmem:[#allocation3] sm:$0xff] }
 0x337   : > { %v3162_v41 = vadd.f32 1.0, %v5943_v39  ;;  %v3281_v39 = vld [vmem:[%s6906_s6 + $0x18] sm:$0xff] }
 0x338   : > { %5956 = vrcp.f32 %v3163_v40 }
 0x339   : > { %v5945_v42 = vpop.eup %5944  ;;  %5958 = vrcp.f32 %v3162_v41 }
 0x33a   : > { %v5947_v43 = vpop.eup %5946  ;;  %v3165_v44 = vadd.f32 1.0, %v5945_v42 }
 0x33b   : > { %v3164_v45 = vadd.f32 1.0, %v5947_v43 }
 0x33c   : > { %5960 = vrcp.f32 %v3165_v44 }
 0x33d   : > { %v5949_v46 = vpop.eup %5948  ;;  %5962 = vrcp.f32 %v3164_v45  ;;  %v3561_v45 = vld [vmem:[#allocation3 + $0x2] sm:$0xff] }
 0x33e   : > { %v5951_v47 = vpop.eup %5950  ;;  %v3167_v48 = vadd.f32 1.0, %v5949_v46 }
 0x33f   : > { %v5953_v49 = vpop.eup %5952  ;;  %3183 = vperm.xlu1 %5903, %v5951_v47  }
 0x340   : > { %v5955_v50 = vpop.eup %5954  ;;  %5964 = vrcp.f32 %v3167_v48  ;;  %3178 = vperm.xlu0 %5902, %v5953_v49   ;;  %v3282_v48 = vld [vmem:[%s6906_s6 + $0x20] sm:$0xff] }
 0x341   : > { %v3166_v51 = vadd.f32 1.0, %v5955_v50 }
 0x342   : > { %v5957_v52 = vpop.eup %5956 }
 0x343   : > { %v5959_v53 = vpop.eup %5958  ;;  %5966 = vrcp.f32 %v3166_v51 }
 0x344   : > { %3193 = vperm.xlu0 %5902, %v5957_v52   ;;  %3188 = vperm.xlu1 %5903, %v5959_v53  }
 0x346   : > { %v5961_v54 = vpop.eup %5960 }
 0x347   : > { %v5963_v55 = vpop.eup %5962 }
 0x348   : > { %3203 = vperm.xlu0 %5902, %v5961_v54   ;;  %3198 = vperm.xlu1 %5903, %v5963_v55   ;;  %v3283_v55 = vld [vmem:[%s6906_s6 + $0x28] sm:$0xff] }
 0x34a   : > { %v5965_v56 = vpop.eup %5964 }
 0x34c   : > { %3213 = vperm.xlu0 %5902, %v5965_v56  }
 0x34d   : > { %v5967_v57 = vpop.eup %5966 }
 0x34e   : > { %3208 = vperm.xlu1 %5903, %v5967_v57   ;;  %v3284_v57 = vld [vmem:[%s6906_s6 + $0x30] sm:$0xff] }
 0x3be   : > { %v3184_v62 = vpop.permute.xlu1 %3183 }
 0x3bf   : > { %v3217_v63 = vmul.f32 %v3184_v62, %v6603_v4  ;;  %v3179_v0 = vpop.permute.xlu0 %3178  ;;  %v3286_v62 = vld [vmem:[%s6906_s6 + $0x40] sm:$0xff] }
 0x3c0   : > { %v3216_v1 = vmul.f32 %v3179_v0, %v6605_v6  ;;  %v4294_v0 = vld [vmem:[#allocation3 + $0x91] sm:$0xff] }
 0x3c1   : > { %v3232_v2 = vadd.f32 %v4995_v60, %v3217_v63  ;;  %v4149_v63 = vld [vmem:[#allocation3 + $0x90] sm:$0xff] }
 0x3c2   : > { %v3231_v3 = vadd.f32 %v4995_v60, %v3216_v1  ;;  %v4439_v1 = vld [vmem:[#allocation3 + $0x92] sm:$0xff] }
 0x3c3   : > { %v3240_v5 = vmax.f32 %v3232_v2, 0.0  ;;  %v3194_v9 = vpop.permute.xlu0 %3193  ;;  %v3189_v10 = vpop.permute.xlu1 %3188  ;;  %v5068_v2 = vld [vmem:[%s6907_s7] ss:$0 sm:$0xff] }
 0x3c4   : > { %v3239_v11 = vmax.f32 %v3231_v3, 0.0  ;;  %v3219_v12 = vmul.f32 %v3194_v9, %v6609_v13  ;;  %v3218_v61 = vmul.f32 %v3189_v10, %v6611_v15 }
 0x3c5   : > { %3271 = vst.msk [vmem:[#allocation3 + $0x21] sm:$0xff] %vm3247_vm3, %v3240_v5 }
 0x3c6   : > { %3270 = vst.msk [vmem:[#allocation3 + $0x11] sm:$0xff] %vm3247_vm3, %v3239_v11  ;;  %v3234_v14 = vadd.f32 %v4995_v60, %v3219_v12  ;;  %v3233_v17 = vadd.f32 %v4995_v60, %v3218_v61 }
 0x3c7   : > { %v3204_v4 = vpop.permute.xlu0 %3203  ;;  %v3199_v19 = vpop.permute.xlu1 %3198 }
 0x3c8   : > { %v3242_v20 = vmax.f32 %v3234_v14, 0.0  ;;  %v3241_v6 = vmax.f32 %v3233_v17, 0.0  ;;  %v3221_v21 = vmul.f32 %v3204_v4, %v6615_v22  ;;  %v3220_v23 = vmul.f32 %v3199_v19, %v6617_v25  ;;  %v3280_v22 = vld [vmem:[%s6906_s6 + $0x10] sm:$0xff] }
 0x3ca   : > { %3273 = vst.msk [vmem:[#allocation3 + $0x41] sm:$0xff] %vm3247_vm3, %v3242_v20  ;;  %3272 = vst.msk [vmem:[#allocation3 + $0x31] sm:$0xff] %vm3247_vm3, %v3241_v6  ;;  %v3236_v13 = vadd.f32 %v4995_v60, %v3221_v21  ;;  %v3235_v15 = vadd.f32 %v4995_v60, %v3220_v23 }
 0x3cb   : > { %v3214_v24 = vpop.permute.xlu0 %3213 }
 0x3cc   : > { %v3244_v8 = vmax.f32 %v3236_v13, 0.0  ;;  %v3243_v7 = vmax.f32 %v3235_v15, 0.0  ;;  %v3223_v16 = vmul.f32 %v3214_v24, %v6621_v26  ;;  %v6655_v28 = vld [vmem:[#allocation3 + $0x21] sm:$0xff] }
 0x3cd   : > { %v3209_v18 = vpop.permute.xlu1 %3208  ;;  %v6645_v27 = vld [vmem:[#allocation3 + $0x11] sm:$0xff]  ;;  %v6686_v40 = vld [vmem:[#allocation3 + $0x20] sm:$0xff] }
 0x3ce   : > { %3275 = vst.msk [vmem:[#allocation3 + $0x61] sm:$0xff] %vm3247_vm3, %v3244_v8  ;;  %3274 = vst.msk [vmem:[#allocation3 + $0x51] sm:$0xff] %vm3247_vm3, %v3243_v7  ;;  %v3238_v25 = vadd.f32 %v4995_v60, %v3223_v16  ;;  %v3222_v29 = vmul.f32 %v3209_v18, %v6623_v30  ;;  %5571 = vmatmul.mubr.msk.f32.vlgmr.msra.gmra.mrb[8].mxu0 %vm3247_vm3, %v6645_v27  ;;  %v3288_v38 = vld [vmem:[#allocation3 + $0x10] sm:$0xff]  ;;  %v6715_v49 = vld [vmem:[#allocation3 + $0x22] sm:$0xff] }
 0x3cf   : > { %5583 = vmatpush3.msra.mxu0 %v3278_v59  ;;  %5573 = vmatprep.mubr.msk.f32.mxu0 %vm3247_vm3, %v6655_v28  ;;  %v3562_v47 = vld [vmem:[#allocation3 + $0x12] sm:$0xff] }
 0x3d0   : > { %v3246_v26 = vmax.f32 %v3238_v25, 0.0  ;;  %v3237_v31 = vadd.f32 %v4995_v60, %v3222_v29  ;;  %5596 = vmatprep.subr.mxu0 %v3280_v22  ;;  %v3285_v59 = vld [vmem:[%s6906_s6 + $0x38] sm:$0xff] }
 0x3d1   : > { %v6659_v32 = vld [vmem:[#allocation3 + $0x31] sm:$0xff]  ;;  %v6661_v33 = vld [vmem:[#allocation3 + $0x41] sm:$0xff] }
 0x3d2   : > { %3277 = vst.msk [vmem:[#allocation3 + $0x81] sm:$0xff] %vm3247_vm3, %v3246_v26  ;;  %v3245_v34 = vmax.f32 %v3237_v31, 0.0  ;;  %5574 = vmatmul.mubr.msk.f32.gmra.mrb[10].mxu0 %vm3247_vm3, %v6659_v32  ;;  %v6690_v41 = vld [vmem:[#allocation3 + $0x30] sm:$0xff]  ;;  %v6694_v42 = vld [vmem:[#allocation3 + $0x40] sm:$0xff] }
 0x3d3   : > { %5576 = vmatprep.mubr.msk.f32.mxu0 %vm3247_vm3, %v6661_v33  ;;  %v6719_v50 = vld [vmem:[#allocation3 + $0x32] sm:$0xff]  ;;  %v6723_v51 = vld [vmem:[#allocation3 + $0x42] sm:$0xff] }
 0x3d4   : > { %3276 = vst.msk [vmem:[#allocation3 + $0x71] sm:$0xff] %vm3247_vm3, %v3245_v34 }
 0x3d5   : > { %v6669_v30 = vld [vmem:[#allocation3 + $0x51] sm:$0xff]  ;;  %v6671_v35 = vld [vmem:[#allocation3 + $0x61] sm:$0xff] }
 0x3d6   : > { %5577 = vmatmul.mubr.msk.f32.gmra.mrb[12].mxu0 %vm3247_vm3, %v6669_v30  ;;  %v6698_v43 = vld [vmem:[#allocation3 + $0x50] sm:$0xff]  ;;  %v6702_v44 = vld [vmem:[#allocation3 + $0x60] sm:$0xff] }
 0x3d7   : > { %5579 = vmatprep.mubr.msk.f32.mxu0 %vm3247_vm3, %v6671_v35  ;;  %v6727_v52 = vld [vmem:[#allocation3 + $0x52] sm:$0xff]  ;;  %v6731_v53 = vld [vmem:[#allocation3 + $0x62] sm:$0xff] }
 0x3d9   : > { %v3713_v56 = vld [vmem:[#allocation3 + $0x80] sm:$0xff] }
 0x3da   : > { %v3858_v58 = vld [vmem:[#allocation3 + $0x81] sm:$0xff] }
 0x3db   : > { %v6677_v37 = vld [vmem:[#allocation3 + $0x71] sm:$0xff]  ;;  %v4003_v60 = vld [vmem:[#allocation3 + $0x82] sm:$0xff] }
 0x3dc   : > { %5580 = vmatmul.mubr.msk.f32.gmra.mrb[14].mxu0 %vm3247_vm3, %v6677_v37  ;;  %v6706_v46 = vld [vmem:[#allocation3 + $0x70] sm:$0xff] }
 0x3dd   : > { %5584 = vmatprep.mubr.msk.f32.mxu0 %vm3247_vm3, %v3287_v36  ;;  %v6735_v54 = vld [vmem:[#allocation3 + $0x72] sm:$0xff] }
 0x3e0   : > { %5585 = vmatmul.mubr.msk.f32.vlgmr.msra.gmra.mrb[8].mxu0 %vm3247_vm3, %v3288_v38 }
 0x3e1   : > { %5597 = vmatpush3.msra.mxu0 %v3280_v22  ;;  %5587 = vmatprep.mubr.msk.f32.mxu0 %vm3247_vm3, %v6686_v40 }
 0x3e2   : > { %5610 = vmatprep.subr.mxu0 %v3281_v39 }
 0x3e4   : > { %5588 = vmatmul.mubr.msk.f32.gmra.mrb[10].mxu0 %vm3247_vm3, %v6690_v41 }
 0x3e5   : > { %5590 = vmatprep.mubr.msk.f32.mxu0 %vm3247_vm3, %v6694_v42 }
 0x3e8   : > { %5591 = vmatmul.mubr.msk.f32.gmra.mrb[12].mxu0 %vm3247_vm3, %v6698_v43 }
 0x3e9   : > { %5593 = vmatprep.mubr.msk.f32.mxu0 %vm3247_vm3, %v6702_v44 }
 0x3ec   : > { %5594 = vmatmul.mubr.msk.f32.gmra.mrb[14].mxu0 %vm3247_vm3, %v6706_v46 }
 0x3ed   : > { %5598 = vmatprep.mubr.msk.f32.mxu0 %vm3247_vm3, %v3561_v45 }
 0x3f0   : > { %5599 = vmatmul.mubr.msk.f32.vlgmr.msra.gmra.mrb[8].mxu0 %vm3247_vm3, %v3562_v47 }
 0x3f1   : > { %5611 = vmatpush3.msra.mxu0 %v3281_v39  ;;  %5601 = vmatprep.mubr.msk.f32.mxu0 %vm3247_vm3, %v6715_v49 }
 0x3f2   : > { %5624 = vmatprep.subr.mxu0 %v3282_v48 }
 0x3f4   : > { %5602 = vmatmul.mubr.msk.f32.gmra.mrb[10].mxu0 %vm3247_vm3, %v6719_v50 }
 0x3f5   : > { %5604 = vmatprep.mubr.msk.f32.mxu0 %vm3247_vm3, %v6723_v51 }
 0x3f8   : > { %5605 = vmatmul.mubr.msk.f32.gmra.mrb[12].mxu0 %vm3247_vm3, %v6727_v52 }
 0x3f9   : > { %5607 = vmatprep.mubr.msk.f32.mxu0 %vm3247_vm3, %v6731_v53 }
 0x3fc   : > { %5608 = vmatmul.mubr.msk.f32.gmra.mrb[14].mxu0 %vm3247_vm3, %v6735_v54 }
 0x3fd   : > { %5612 = vmatprep.mubr.msk.f32.mxu0 %vm3247_vm3, %v3288_v38 }
 0x400   : > { %5613 = vmatmul.mubr.msk.f32.vlgmr.msra.gmra.mrb[8].mxu0 %vm3247_vm3, %v6686_v40 }
 0x401   : > { %5625 = vmatpush3.msra.mxu0 %v3282_v48  ;;  %5615 = vmatprep.mubr.msk.f32.mxu0 %vm3247_vm3, %v6690_v41 }
 0x402   : > { %5638 = vmatprep.subr.mxu0 %v3283_v55 }
 0x404   : > { %5616 = vmatmul.mubr.msk.f32.gmra.mrb[10].mxu0 %vm3247_vm3, %v6694_v42 }
 0x405   : > { %5618 = vmatprep.mubr.msk.f32.mxu0 %vm3247_vm3, %v6698_v43 }
 0x408   : > { %5619 = vmatmul.mubr.msk.f32.gmra.mrb[12].mxu0 %vm3247_vm3, %v6702_v44 }
 0x409   : > { %5621 = vmatprep.mubr.msk.f32.mxu0 %vm3247_vm3, %v6706_v46 }
 0x40c   : > { %5622 = vmatmul.mubr.msk.f32.gmra.mrb[14].mxu0 %vm3247_vm3, %v3713_v56 }
 0x40d   : > { %5626 = vmatprep.mubr.msk.f32.mxu0 %vm3247_vm3, %v6645_v27 }
 0x410   : > { %5627 = vmatmul.mubr.msk.f32.vlgmr.msra.gmra.mrb[8].mxu0 %vm3247_vm3, %v6655_v28 }
 0x411   : > { %5639 = vmatpush3.msra.mxu0 %v3283_v55  ;;  %5629 = vmatprep.mubr.msk.f32.mxu0 %vm3247_vm3, %v6659_v32 }
 0x412   : > { %5652 = vmatprep.subr.mxu0 %v3284_v57 }
 0x414   : > { %5630 = vmatmul.mubr.msk.f32.gmra.mrb[10].mxu0 %vm3247_vm3, %v6661_v33 }
 0x415   : > { %5632 = vmatprep.mubr.msk.f32.mxu0 %vm3247_vm3, %v6669_v30 }
 0x418   : > { %5633 = vmatmul.mubr.msk.f32.gmra.mrb[12].mxu0 %vm3247_vm3, %v6671_v35 }
 0x419   : > { %5635 = vmatprep.mubr.msk.f32.mxu0 %vm3247_vm3, %v6677_v37 }
 0x41c   : > { %5636 = vmatmul.mubr.msk.f32.gmra.mrb[14].mxu0 %vm3247_vm3, %v3858_v58 }
 0x41d   : > { %5640 = vmatprep.mubr.msk.f32.mxu0 %vm3247_vm3, %v3562_v47 }
 0x420   : > { %5641 = vmatmul.mubr.msk.f32.vlgmr.msra.gmra.mrb[8].mxu0 %vm3247_vm3, %v6715_v49 }
 0x421   : > { %5653 = vmatpush3.msra.mxu0 %v3284_v57  ;;  %5643 = vmatprep.mubr.msk.f32.mxu0 %vm3247_vm3, %v6719_v50 }
 0x422   : > { %5666 = vmatprep.subr.mxu0 %v3285_v59 }
 0x424   : > { %5644 = vmatmul.mubr.msk.f32.gmra.mrb[10].mxu0 %vm3247_vm3, %v6723_v51 }
 0x425   : > { %5646 = vmatprep.mubr.msk.f32.mxu0 %vm3247_vm3, %v6727_v52 }
 0x428   : > { %5647 = vmatmul.mubr.msk.f32.gmra.mrb[12].mxu0 %vm3247_vm3, %v6731_v53 }
 0x429   : > { %5649 = vmatprep.mubr.msk.f32.mxu0 %vm3247_vm3, %v6735_v54 }
 0x42c   : > { %5650 = vmatmul.mubr.msk.f32.gmra.mrb[14].mxu0 %vm3247_vm3, %v4003_v60 }
 0x42d   : > { %5654 = vmatprep.mubr.msk.f32.mxu0 %vm3247_vm3, %v6686_v40 }
 0x430   : > { %5655 = vmatmul.mubr.msk.f32.vlgmr.msra.gmra.mrb[8].mxu0 %vm3247_vm3, %v6690_v41 }
 0x431   : > { %5667 = vmatpush3.msra.mxu0 %v3285_v59  ;;  %5657 = vmatprep.mubr.msk.f32.mxu0 %vm3247_vm3, %v6694_v42 }
 0x432   : > { %5680 = vmatprep.subr.mxu0 %v3286_v62 }
 0x434   : > { %5658 = vmatmul.mubr.msk.f32.gmra.mrb[10].mxu0 %vm3247_vm3, %v6698_v43 }
 0x435   : > { %5660 = vmatprep.mubr.msk.f32.mxu0 %vm3247_vm3, %v6702_v44 }
 0x438   : > { %5661 = vmatmul.mubr.msk.f32.gmra.mrb[12].mxu0 %vm3247_vm3, %v6706_v46 }
 0x439   : > { %5663 = vmatprep.mubr.msk.f32.mxu0 %vm3247_vm3, %v3713_v56 }
 0x43c   : > { %5664 = vmatmul.mubr.msk.f32.gmra.mrb[14].mxu0 %vm3247_vm3, %v4149_v63 }
 0x43d   : > { %5668 = vmatprep.mubr.msk.f32.mxu0 %vm3247_vm3, %v6655_v28 }
 0x440   : > { %5669 = vmatmul.mubr.msk.f32.vlgmr.msra.gmra.mrb[8].mxu0 %vm3247_vm3, %v6659_v32 }
 0x441   : > { %5681 = vmatpush3.msra.mxu0 %v3286_v62  ;;  %5671 = vmatprep.mubr.msk.f32.mxu0 %vm3247_vm3, %v6661_v33 }
 0x444   : > { %5672 = vmatmul.mubr.msk.f32.gmra.mrb[10].mxu0 %vm3247_vm3, %v6669_v30 }
 0x445   : > { %5674 = vmatprep.mubr.msk.f32.mxu0 %vm3247_vm3, %v6671_v35 }
 0x448   : > { %5675 = vmatmul.mubr.msk.f32.gmra.mrb[12].mxu0 %vm3247_vm3, %v6677_v37 }
 0x449   : > { %5677 = vmatprep.mubr.msk.f32.mxu0 %vm3247_vm3, %v3858_v58  ;;  %v5069_v58 = vld [vmem:[%s6908_s8] ss:$0 sm:$0xff] }
 0x44c   : > { %5678 = vmatmul.mubr.msk.f32.gmra.mrb[14].mxu0 %vm3247_vm3, %v4294_v0 }
 0x44d   : > { %5682 = vmatprep.mubr.msk.f32.mxu0 %vm3247_vm3, %v6715_v49 }
 0x450   : > { %5683 = vmatmul.mubr.msk.f32.vlgmr.msra.gmra.mrb[8].mxu0 %vm3247_vm3, %v6719_v50 }
 0x451   : > { %5685 = vmatprep.mubr.msk.f32.mxu0 %vm3247_vm3, %v6723_v51 }
 0x454   : > { %5686 = vmatmul.mubr.msk.f32.gmra.mrb[10].mxu0 %vm3247_vm3, %v6727_v52 }
 0x455   : > { %5688 = vmatprep.mubr.msk.f32.mxu0 %vm3247_vm3, %v6731_v53 }
 0x458   : > { %5689 = vmatmul.mubr.msk.f32.gmra.mrb[12].mxu0 %vm3247_vm3, %v6735_v54 }
 0x459   : > { %5691 = vmatprep.mubr.msk.f32.mxu0 %vm3247_vm3, %v4003_v60 }
 0x45c   : > { %5692 = vmatmul.mubr.msk.f32.gmra.mrb[14].mxu0 %vm3247_vm3, %v4439_v1 }
 0x523   : > { %v5684_v3 = vpop.f32.mrb[8].mxu0 }
 0x524   : > { %v6839_v5 = vadd.f32 %v5684_v3, %v5068_v2  ;;  %v4530_v9 = vpop.f32.mrb[9].mxu0 }
 0x525   : > { %v6841_v10 = vadd.f32 %v5068_v2, %v4530_v9 }
 0x526   : > { %v4593_v11 = vsub.f32 0.0, %v6839_v5 }
 0x527   : > { %v4592_v12 = vsub.f32 0.0, %v6841_v10  ;;  %v5687_v61 = vpop.f32.mrb[10].mxu0 }
 0x528   : > { %v4602_v14 = vmul.f32 1.442695, %v4593_v11  ;;  %v6845_v17 = vadd.f32 %v5687_v61, %v5068_v2  ;;  %v4540_v4 = vpop.f32.mrb[11].mxu0 }
 0x529   : > { %v4600_v19 = vmul.f32 1.442695, %v4592_v12  ;;  %v6847_v20 = vadd.f32 %v5068_v2, %v4540_v4 }
 0x52a   : > { %5968 = vpow2.f32 %v4602_v14  ;;  %v4595_v6 = vsub.f32 0.0, %v6845_v17 }
 0x52b   : > { %5970 = vpow2.f32 %v4600_v19  ;;  %v4594_v21 = vsub.f32 0.0, %v6847_v20  ;;  %v5690_v23 = vpop.f32.mrb[12].mxu0 }
 0x52c   : > { %v4606_v13 = vmul.f32 1.442695, %v4595_v6  ;;  %v6851_v15 = vadd.f32 %v5690_v23, %v5068_v2  ;;  %v4550_v24 = vpop.f32.mrb[13].mxu0 }
 0x52d   : > { %v4604_v8 = vmul.f32 1.442695, %v4594_v21  ;;  %v6853_v7 = vadd.f32 %v5068_v2, %v4550_v24 }
 0x52e   : > { %5972 = vpow2.f32 %v4606_v13  ;;  %v4597_v16 = vsub.f32 0.0, %v6851_v15 }
 0x52f   : > { %5974 = vpow2.f32 %v4604_v8  ;;  %v4596_v18 = vsub.f32 0.0, %v6853_v7  ;;  %v5693_v27 = vpop.f32.mrb[14].mxu0 }
 0x530   : > { %v4610_v22 = vmul.f32 1.442695, %v4597_v16  ;;  %v6857_v25 = vadd.f32 %v5693_v27, %v5068_v2  ;;  %v4560_v29 = vpop.f32.mrb[15].mxu0 }
 0x531   : > { %v4608_v28 = vmul.f32 1.442695, %v4596_v18  ;;  %v6859_v26 = vadd.f32 %v5068_v2, %v4560_v29 }
 0x532   : > { %5976 = vpow2.f32 %v4610_v22  ;;  %v4599_v31 = vsub.f32 0.0, %v6857_v25 }
 0x533   : > { %5978 = vpow2.f32 %v4608_v28  ;;  %v4598_v32 = vsub.f32 0.0, %v6859_v26 }
 0x534   : > { %v5969_v33 = vpop.eup %5968  ;;  %v4614_v34 = vmul.f32 1.442695, %v4599_v31 }
 0x535   : > { %v5971_v30 = vpop.eup %5970  ;;  %v4617_v35 = vadd.f32 1.0, %v5969_v33  ;;  %v4612_v36 = vmul.f32 1.442695, %v4598_v32 }
 0x536   : > { %v4616_v37 = vadd.f32 1.0, %v5971_v30  ;;  %5980 = vpow2.f32 %v4614_v34 }
 0x537   : > { %5982 = vrcp.f32 %v4617_v35 }
 0x538   : > { %v5973_v38 = vpop.eup %5972  ;;  %5984 = vrcp.f32 %v4616_v37 }
 0x539   : > { %v5975_v39 = vpop.eup %5974  ;;  %v4619_v40 = vadd.f32 1.0, %v5973_v38  ;;  %5986 = vpow2.f32 %v4612_v36 }
 0x53a   : > { %v4618_v41 = vadd.f32 1.0, %v5975_v39 }
 0x53b   : > { %5988 = vrcp.f32 %v4619_v40 }
 0x53c   : > { %v5977_v42 = vpop.eup %5976  ;;  %5990 = vrcp.f32 %v4618_v41 }
 0x53d   : > { %v5979_v43 = vpop.eup %5978  ;;  %v4621_v44 = vadd.f32 1.0, %v5977_v42 }
 0x53e   : > { %v4620_v45 = vadd.f32 1.0, %v5979_v43 }
 0x53f   : > { %5992 = vrcp.f32 %v4621_v44 }
 0x540   : > { %v5981_v46 = vpop.eup %5980  ;;  %5994 = vrcp.f32 %v4620_v45 }
 0x541   : > { %v5983_v47 = vpop.eup %5982  ;;  %v4623_v48 = vadd.f32 1.0, %v5981_v46 }
 0x542   : > { %v5985_v49 = vpop.eup %5984  ;;  %4639 = vperm.xlu0 %5902, %v5983_v47  }
 0x543   : > { %v5987_v50 = vpop.eup %5986  ;;  %5996 = vrcp.f32 %v4623_v48  ;;  %4634 = vperm.xlu1 %5903, %v5985_v49  }
 0x544   : > { %v4622_v51 = vadd.f32 1.0, %v5987_v50 }
 0x545   : > { %v5989_v52 = vpop.eup %5988 }
 0x546   : > { %v5991_v53 = vpop.eup %5990  ;;  %5998 = vrcp.f32 %v4622_v51  ;;  %4649 = vperm.xlu0 %5902, %v5989_v52  }
 0x547   : > { %4644 = vperm.xlu1 %5903, %v5991_v53  }
 0x549   : > { %v5993_v54 = vpop.eup %5992 }
 0x54a   : > { %v5995_v55 = vpop.eup %5994  ;;  %4659 = vperm.xlu0 %5902, %v5993_v54  }
 0x54b   : > { %4654 = vperm.xlu1 %5903, %v5995_v55  }
 0x54d   : > { %v5997_v56 = vpop.eup %5996 }
 0x54e   : > { %4669 = vperm.xlu0 %5902, %v5997_v56  }
 0x550   : > { %v5999_v57 = vpop.eup %5998 }
 0x551   : > { %4664 = vperm.xlu1 %5903, %v5999_v57  }
 0x5c1   : > { %v4640_v59 = vpop.permute.xlu0 %4639 }
 0x5c2   : > { %v4673_v60 = vmul.f32 %v4640_v59, %v6839_v5  ;;  %v4635_v62 = vpop.permute.xlu1 %4634 }
 0x5c3   : > { %v4672_v63 = vmul.f32 %v4635_v62, %v6841_v10 }
 0x5c4   : > { %v4688_v0 = vadd.f32 %v5069_v58, %v4673_v60 }
 0x5c5   : > { %v4687_v1 = vadd.f32 %v5069_v58, %v4672_v63  ;;  %v4650_v2 = vpop.permute.xlu0 %4649 }
 0x5c6   : > { %v4696_v3 = vmax.f32 %v4688_v0, 0.0  ;;  %v4675_v9 = vmul.f32 %v4650_v2, %v6845_v17  ;;  %v4645_v11 = vpop.permute.xlu1 %4644 }
 0x5c7   : > { %v4695_v5 = vmax.f32 %v4687_v1, 0.0  ;;  %v4674_v12 = vmul.f32 %v4645_v11, %v6847_v20 }
 0x5c8   : > { %4704 = vst.msk [vmem:[%s6873_s29 + $0x8] sm:$0xff] %vm3247_vm3, %v4696_v3  ;;  %v4690_v10 = vadd.f32 %v5069_v58, %v4675_v9 }
 0x5c9   : > { %4703 = vst.msk [vmem:[%s6873_s29] sm:$0xff] %vm3247_vm3, %v4695_v5  ;;  %v4689_v61 = vadd.f32 %v5069_v58, %v4674_v12  ;;  %v4660_v14 = vpop.permute.xlu0 %4659 }
 0x5ca   : > { %v4698_v4 = vmax.f32 %v4690_v10, 0.0  ;;  %v4677_v19 = vmul.f32 %v4660_v14, %v6851_v15  ;;  %v4655_v6 = vpop.permute.xlu1 %4654 }
 0x5cb   : > { %v4697_v21 = vmax.f32 %v4689_v61, 0.0  ;;  %v4676_v17 = vmul.f32 %v4655_v6, %v6853_v7 }
 0x5cc   : > { %4706 = vst.msk [vmem:[%s6873_s29 + $0x18] sm:$0xff] %vm3247_vm3, %v4698_v4  ;;  %v4692_v20 = vadd.f32 %v5069_v58, %v4677_v19 }
 0x5cd   : > { %4705 = vst.msk [vmem:[%s6873_s29 + $0x10] sm:$0xff] %vm3247_vm3, %v4697_v21  ;;  %v4691_v23 = vadd.f32 %v5069_v58, %v4676_v17  ;;  %v4670_v13 = vpop.permute.xlu0 %4669 }
 0x5ce   : > { %v4700_v24 = vmax.f32 %v4692_v20, 0.0  ;;  %v4679_v8 = vmul.f32 %v4670_v13, %v6857_v25 }
 0x5cf   : > { %v4699_v16 = vmax.f32 %v4691_v23, 0.0 }
 0x5d0   : > { %4708 = vst.msk [vmem:[%s6873_s29 + $0x28] sm:$0xff] %vm3247_vm3, %v4700_v24  ;;  %v4694_v15 = vadd.f32 %v5069_v58, %v4679_v8  ;;  %v4665_v18 = vpop.permute.xlu1 %4664 }
 0x5d1   : > { %4707 = vst.msk [vmem:[%s6873_s29 + $0x20] sm:$0xff] %vm3247_vm3, %v4699_v16  ;;  %v4678_v7 = vmul.f32 %v4665_v18, %v6859_v26 }
 0x5d2   : > { %v4702_v27 = vmax.f32 %v4694_v15, 0.0 }
 0x5d3   : > { %v4693_v22 = vadd.f32 %v5069_v58, %v4678_v7 }
 0x5d4   : > { %4710 = vst.msk [vmem:[%s6873_s29 + $0x38] sm:$0xff] %vm3247_vm3, %v4702_v27 }
 0x5d5   : > { %v4701_v29 = vmax.f32 %v4693_v22, 0.0 }
 0x5d7   : > { %4709 = vst.msk [vmem:[%s6873_s29 + $0x30] sm:$0xff] %vm3247_vm3, %v4701_v29 }
 0x5d8 PF: > { %s19_s30 = sadd.s32 1, %s6006_s30  }
 0x5d9   : > { %p16_p5 = scmp.ge.s32.totalorder %s19_s30, 4  }
 0x5db   :  { %18 = sbr.rel (!%p16_p5) target bundleno = 1 (0x1), region = 95 }

</bundles_post_ra>
